<compile_context>
chip_gen: v5e
topology: v5e:2x2
jax: 0.10.0
libtpu: 0.0.40
codegen_flags: <defaults>
</compile_context>

<pallas_src>
import jax
import jax.numpy as jnp
import numpy as np
from jax.experimental import pallas as pl
from jax.experimental.pallas import tpu as pltpu

NUM_CLASSES = 80
REG_MAX = 16
R_BINS = REG_MAX + 1            # 17 DFL bins per box side
N_REG = 4 * R_BINS              # 68 regression logits
OUT_W = 4 + NUM_CLASSES         # 84 = torch output width
OUT_PAD = 128                   # lane-dense decode output width

# fused head column layout (chosen so the decode epilogue is vreg-aligned):
CLS_OFF = 4                     # cls logits at cols 4..83 (== final output lanes)
REG_OFF = 128                   # reg logits at cols 128..195 (vreg-aligned start)
HEAD_N = 256                    # fused head width (2 vregs)
CONV_N = 128                    # conv output lanes (true channels zero-padded)

_CONV = [(3, 16), (16, 32), (32, 48), (48, 64), (64, 96)]   # (cin, cout), stride 2
_HEAD_CIN = [48, 64, 96]        # true channels of P3 / P4 / P5
_STRIDES = (8, 16, 32)


def _round_up(x, m):
    return ((x + m - 1) // m) * m


def _choose_tm(M, cap=1024):
    """Row tile: aim for >=2 grid steps (v7x dual TC), capped for VMEM."""
    half = _round_up(max(1, (M + 1) // 2), 16)
    return int(max(16, min(cap, half)))


# ----------------------------------------------------------------------------
# Pallas kernel A: conv-as-matmul (im2col patches) + bias + ReLU.
# bf16 operands on the MXU, f32 accumulation, bf16 lane-dense output.
# ----------------------------------------------------------------------------
def _conv_mm_kernel(x_ref, w_ref, b_ref, o_ref):
    acc = jnp.dot(x_ref[...], w_ref[...], preferred_element_type=jnp.float32)
    acc = jnp.maximum(acc + b_ref[...], 0.0)
    o_ref[...] = acc.astype(o_ref.dtype)


def pallas_conv_matmul(x, w, b):
    """x: [M, K] bf16 (K mult of 16), w: [K, 128] bf16, b: [1, 128] f32."""
    M, K = x.shape
    N = w.shape[1]
    TM = _choose_tm(M)
    Mp = _round_up(M, TM)
    if Mp != M:
        x = jnp.pad(x, ((0, Mp - M), (0, 0)))
    out = pl.pallas_call(
        _conv_mm_kernel,
        out_shape=jax.ShapeDtypeStruct((Mp, N), jnp.bfloat16),
        grid=(Mp // TM,),
        in_specs=[
            pl.BlockSpec((TM, K), lambda i: (i, 0)),
            pl.BlockSpec((K, N), lambda i: (0, 0)),
            pl.BlockSpec((1, N), lambda i: (0, 0)),
        ],
        out_specs=pl.BlockSpec((TM, N), lambda i: (i, 0)),
        compiler_params=pltpu.CompilerParams(dimension_semantics=("parallel",)),
    )(x, w, b)
    return out[:M] if Mp != M else out


# ----------------------------------------------------------------------------
# Pallas kernel B: fused head matmul + DFL + box decode + sigmoid + concat.
#   f_ref  : [TM, 128]  flattened level feature map (bf16)
#   w_ref  : [128, 256] fused reg+cls head weight (bf16, reordered columns)
#   b_ref  : [1, 256]   head bias (f32)
#   dfl_ref: [128, 128] constant DFL indicator/projection matrix (f32)
#   o_ref  : [TM, 128]  [x1,y1,x2,y2, 80 scores, 44 zero pad]
# Level geometry (H, W, stride) is baked in per pallas_call.
# ----------------------------------------------------------------------------
def _make_head_decode_kernel(H, W, stride):
    HWf = float(H * W)
    Wf = float(W)
    sf = float(stride)

    def kernel(f_ref, w_ref, b_ref, dfl_ref, o_ref):
        rows = f_ref.shape[0]
        # fused reg+cls 1x1 head: one lane-dense MXU matmul, f32 accumulate.
        acc = jnp.dot(f_ref[...], w_ref[...], preferred_element_type=jnp.float32)
        acc = acc + b_ref[...]                                      # [TM, 256]

        # --- DFL softmax-expectation (shared row-max, exp, one tiny matmul) --
        reg = acc[:, REG_OFF:REG_OFF + N_REG]                       # [TM, 68]
        reg_full = acc[:, REG_OFF:]                                 # [TM, 128] aligned
        m = jnp.max(reg, axis=-1, keepdims=True)                    # one XLU reduce
        e = jnp.exp(jnp.minimum(reg_full - m, 0.0))                 # pad lanes clamped
        # dfl cols 0..3 = per-side indicator (denominator),
        # cols 4..7 = signed indicator*bin (numerator, already -l,-t,+r,+b).
        nd = jnp.dot(e, dfl_ref[...], preferred_element_type=jnp.float32)
        den = nd[:, 0:4]
        num = nd[:, 4:8]
        dist = num * pl.reciprocal(den, approx=True)                # [TM, 4]

        # --- anchors synthesized in-kernel (no aux HBM stream) ---------------
        ridx = ((pl.program_id(0) * rows).astype(jnp.float32)
                + jax.lax.broadcasted_iota(jnp.int32, (rows, 1), 0)
                  .astype(jnp.float32))                             # global row
        aidx = ridx - jnp.floor(ridx / HWf) * HWf                   # strip batch
        ay = jnp.floor(aidx / Wf)
        ax = aidx - ay * Wf
        anc = jnp.concatenate([ax, ay, ax, ay], axis=-1) + 0.5      # [TM, 4]
        boxes = (anc + dist) * sf                                   # x1,y1,x2,y2

        # --- lane-dense epilogue: pure VPU lane select ------------------------
        lane = jax.lax.broadcasted_iota(jnp.int32, (rows, OUT_PAD), 1)
        scores = jax.nn.sigmoid(acc[:, :OUT_PAD])                   # cls on lanes 4..83
        boxes_p = jnp.concatenate(
            [boxes, jnp.zeros((rows, OUT_PAD - 4), jnp.float32)], axis=-1)
        o_ref[...] = jnp.where(lane < 4, boxes_p,
                               jnp.where(lane < OUT_W, scores, 0.0))
    return kernel


def pallas_head_decode(feat, w, b, dfl, H, W, stride):
    B = feat.shape[0]
    M = B * H * W
    f2 = feat.reshape(M, feat.shape[-1])
    C = f2.shape[1]
    TM = _choose_tm(M)
    Mp = _round_up(M, TM)
    if Mp != M:
        f2 = jnp.pad(f2, ((0, Mp - M), (0, 0)))
    out = pl.pallas_call(
        _make_head_decode_kernel(H, W, stride),
        out_shape=jax.ShapeDtypeStruct((Mp, OUT_PAD), jnp.float32),
        grid=(Mp // TM,),
        in_specs=[
            pl.BlockSpec((TM, C), lambda i: (i, 0)),
            pl.BlockSpec((C, HEAD_N), lambda i: (0, 0)),
            pl.BlockSpec((1, HEAD_N), lambda i: (0, 0)),
            pl.BlockSpec((OUT_PAD, OUT_PAD), lambda i: (0, 0)),
        ],
        out_specs=pl.BlockSpec((TM, OUT_PAD), lambda i: (i, 0)),
        compiler_params=pltpu.CompilerParams(dimension_semantics=("parallel",)),
    )(f2, w, b, dfl)
    return out[:M].reshape(B, H * W, OUT_PAD)


# ----------------------------------------------------------------------------
# Glue: im2col with TRUE channel counts (fused into the strided slices),
# parameters, full forward pass.
# ----------------------------------------------------------------------------
def conv3x3_s2(x_nhwc, cin, w, b):
    """3x3 stride-2 pad-1 conv via true-channel bf16 im2col + Pallas matmul+ReLU."""
    B, H, W, _ = x_nhwc.shape
    xp = jnp.pad(x_nhwc[..., :cin], ((0, 0), (1, 1), (1, 1), (0, 0)))
    Hout = (H + 1) // 2
    Wout = (W + 1) // 2
    cols = []
    for kh in range(3):
        for kw in range(3):
            cols.append(xp[:, kh:kh + 2 * Hout - 1:2, kw:kw + 2 * Wout - 1:2, :])
    patches = jnp.stack(cols, axis=3).reshape(B * Hout * Wout, 9 * cin)
    K = w.shape[0]                                  # true K rounded up to 16
    if K != 9 * cin:
        patches = jnp.pad(patches, ((0, 0), (0, K - 9 * cin)))
    out = pallas_conv_matmul(patches.astype(jnp.bfloat16), w, b)
    return out.reshape(B, Hout, Wout, CONV_N)


def make_dfl_matrix():
    D = np.zeros((OUT_PAD, OUT_PAD), np.float32)
    for g in range(4):
        sgn = -1.0 if g < 2 else 1.0                # (l, t) subtract, (r, b) add
        for j in range(R_BINS):
            D[g * R_BINS + j, g] = 1.0              # softmax denominator column
            D[g * R_BINS + j, 4 + g] = sgn * j      # signed expectation numerator
    return jnp.asarray(D)


def init_params(key):
    """Deterministic synthetic weights, padded once at init (never at runtime)."""
    params = {}
    keys = jax.random.split(key, len(_CONV) + 2 * len(_HEAD_CIN))
    ki = 0
    for i, (cin, cout) in enumerate(_CONV):
        k_true = 9 * cin
        k_pad = _round_up(k_true, 16)               # bf16 sublane multiple
        w = (jax.random.normal(keys[ki], (k_true, cout), jnp.float32)
             / np.sqrt(float(k_true)))
        ki += 1
        w = jnp.pad(w, ((0, k_pad - k_true), (0, CONV_N - cout)))
        params[f"conv{i}_w"] = w.astype(jnp.bfloat16)
        params[f"conv{i}_b"] = jnp.zeros((1, CONV_N), jnp.float32)
    for li, cin in enumerate(_HEAD_CIN):
        wr = (jax.random.normal(keys[ki], (cin, N_REG), jnp.float32)
              / np.sqrt(float(cin)))
        ki += 1
        wc = (jax.random.normal(keys[ki], (cin, NUM_CLASSES), jnp.float32)
              / np.sqrt(float(cin)))
        ki += 1
        # K kept at 128 (feature map is physically 128 lanes; zero rows are free);
        # columns placed so cls logits align with output lanes 4..83 and reg
        # logits start at vreg-aligned lane 128.
        w = jnp.zeros((CONV_N, HEAD_N), jnp.float32)
        w = w.at[:cin, CLS_OFF:CLS_OFF + NUM_CLASSES].set(wc)
        w = w.at[:cin, REG_OFF:REG_OFF + N_REG].set(wr)
        params[f"head{li}_w"] = w.astype(jnp.bfloat16)
        params[f"head{li}_b"] = jnp.zeros((1, HEAD_N), jnp.float32)
    params["dfl"] = make_dfl_matrix()
    return params


@jax.jit
def alpha_yolonas_forward(x_nchw, params):
    # NCHW (PyTorch) -> NHWC internally (channels on the TPU lane dim).
    x = jnp.transpose(x_nchw, (0, 2, 3, 1)).astype(jnp.bfloat16)
    feats = []
    c = x
    for i, (cin, _) in enumerate(_CONV):
        c = conv3x3_s2(c, cin, params[f"conv{i}_w"], params[f"conv{i}_b"])
        if i >= 2:
            feats.append(c)                          # P3 (s8), P4 (s16), P5 (s32)
    outs = []
    for li, (f, s) in enumerate(zip(feats, _STRIDES)):
        _, H, W, _ = f.shape
        outs.append(pallas_head_decode(
            f, params[f"head{li}_w"], params[f"head{li}_b"], params["dfl"],
            H, W, s))
    out = jnp.concatenate(outs, axis=1)              # [B, A, 128]
    return out[..., :OUT_W]                          # torch.cat((boxes, scores), 2)


if __name__ == "__main__":
    key = jax.random.PRNGKey(0)
    kp, kx = jax.random.split(key)
    params = init_params(kp)
    # Small YOLO-style image input, NCHW like the PyTorch module expects.
    x = jax.random.normal(kx, (2, 3, 32, 32), jnp.float32)
    y = alpha_yolonas_forward(x, params)
    y = jax.block_until_ready(y)
    # P3 4x4 + P4 2x2 + P5 1x1 = 21 anchors per image; 4 box + 80 class scores.
    assert y.shape == (2, 21, 84), y.shape
    assert bool(jnp.all(jnp.isfinite(y)))
    print("KERNEL_OK")
</pallas_src>

<mosaic_0001>
module attributes {stable_mosaic.version = 11 : i64} {
  func.func @_conv_mm_kernel(%arg0: i32, %arg1: memref<256x32xbf16, #tpu.memory_space<vmem>>, %arg2: memref<32x128xbf16, #tpu.memory_space<vmem>>, %arg3: memref<1x128xf32, #tpu.memory_space<vmem>>, %arg4: memref<256x128xbf16, #tpu.memory_space<vmem>>) attributes {dimension_semantics = [#tpu.dimension_semantics<parallel>], iteration_bounds = array<i64: 2>, scalar_prefetch = 0 : i64, scratch_operands = 0 : i64, tpu.core_type = #tpu.core_type<tc>, window_params = [{transform_indices = @transform_0, window_bounds = array<i64: 256, 32>}, {pipeline_mode = #tpu.pipeline_mode<synchronous>, transform_indices = @transform_1, window_bounds = array<i64: 32, 128>}, {pipeline_mode = #tpu.pipeline_mode<synchronous>, transform_indices = @transform_2, window_bounds = array<i64: 1, 128>}, {transform_indices = @transform_3, window_bounds = array<i64: 256, 128>}]} {
    %c0 = arith.constant 0 : index
    %c0_0 = arith.constant 0 : index
    %0 = vector.load %arg1[%c0, %c0_0] : memref<256x32xbf16, #tpu.memory_space<vmem>>, vector<256x32xbf16>
    %c0_1 = arith.constant 0 : index
    %c0_2 = arith.constant 0 : index
    %1 = vector.load %arg2[%c0_1, %c0_2] : memref<32x128xbf16, #tpu.memory_space<vmem>>, vector<32x128xbf16>
    %cst = arith.constant dense<0.000000e+00> : vector<256x128xf32>
    %2 = tpu.matmul %0, %1, %cst {dimension_numbers = #tpu.dot_dimension_numbers<[1], [0], [0], [1], [0, 0, 1, 1], [], []>} : vector<256x32xbf16>, vector<32x128xbf16>, vector<256x128xf32> -> vector<256x128xf32>
    %c0_3 = arith.constant 0 : index
    %c0_4 = arith.constant 0 : index
    %3 = vector.load %arg3[%c0_3, %c0_4] : memref<1x128xf32, #tpu.memory_space<vmem>>, vector<1x128xf32>
    %4 = vector.broadcast %3 : vector<1x128xf32> to vector<256x128xf32>
    %5 = arith.addf %2, %4 : vector<256x128xf32>
    %cst_5 = arith.constant 0.000000e+00 : f32
    %6 = vector.broadcast %cst_5 : f32 to vector<256x128xf32>
    %7 = arith.maximumf %5, %6 : vector<256x128xf32>
    %8 = arith.truncf %7 : vector<256x128xf32> to vector<256x128xbf16>
    %c0_6 = arith.constant 0 : index
    %c0_7 = arith.constant 0 : index
    %9 = vector.load %arg4[%c0_6, %c0_7] : memref<256x128xbf16, #tpu.memory_space<vmem>>, vector<256x128xbf16>
    tpu.vector_store %arg4[%c0_6, %c0_7], %8 {strides = array<i32>} : memref<256x128xbf16, #tpu.memory_space<vmem>>, vector<256x128xbf16>,
    return
  }
  func.func @transform_0(%arg0: i32) -> (i32, i32) {
    %c0_i32 = arith.constant 0 : i32
    %c0_i32_0 = arith.constant 0 : i32
    return %arg0, %c0_i32 : i32, i32
  }
  func.func @transform_1(%arg0: i32) -> (i32, i32) {
    %c0_i32 = arith.constant 0 : i32
    %c0_i32_0 = arith.constant 0 : i32
    %c0_i32_1 = arith.constant 0 : i32
    return %c0_i32, %c0_i32_0 : i32, i32
  }
  func.func @transform_2(%arg0: i32) -> (i32, i32) {
    %c0_i32 = arith.constant 0 : i32
    %c0_i32_0 = arith.constant 0 : i32
    %c0_i32_1 = arith.constant 0 : i32
    return %c0_i32, %c0_i32_0 : i32, i32
  }
  func.func @transform_3(%arg0: i32) -> (i32, i32) {
    %c0_i32 = arith.constant 0 : i32
    %c0_i32_0 = arith.constant 0 : i32
    return %arg0, %c0_i32 : i32, i32
  }
}

module attributes {stable_mosaic.version = 11 : i64} {
  func.func @_conv_mm_kernel(%arg0: i32, %arg1: memref<64x144xbf16, #tpu.memory_space<vmem>>, %arg2: memref<144x128xbf16, #tpu.memory_space<vmem>>, %arg3: memref<1x128xf32, #tpu.memory_space<vmem>>, %arg4: memref<64x128xbf16, #tpu.memory_space<vmem>>) attributes {dimension_semantics = [#tpu.dimension_semantics<parallel>], iteration_bounds = array<i64: 2>, scalar_prefetch = 0 : i64, scratch_operands = 0 : i64, tpu.core_type = #tpu.core_type<tc>, window_params = [{transform_indices = @transform_0, window_bounds = array<i64: 64, 144>}, {pipeline_mode = #tpu.pipeline_mode<synchronous>, transform_indices = @transform_1, window_bounds = array<i64: 144, 128>}, {pipeline_mode = #tpu.pipeline_mode<synchronous>, transform_indices = @transform_2, window_bounds = array<i64: 1, 128>}, {transform_indices = @transform_3, window_bounds = array<i64: 64, 128>}]} {
    %c0 = arith.constant 0 : index
    %c0_0 = arith.constant 0 : index
    %0 = vector.load %arg1[%c0, %c0_0] : memref<64x144xbf16, #tpu.memory_space<vmem>>, vector<64x144xbf16>
    %c0_1 = arith.constant 0 : index
    %c0_2 = arith.constant 0 : index
    %1 = vector.load %arg2[%c0_1, %c0_2] : memref<144x128xbf16, #tpu.memory_space<vmem>>, vector<144x128xbf16>
    %cst = arith.constant dense<0.000000e+00> : vector<64x128xf32>
    %2 = tpu.matmul %0, %1, %cst {dimension_numbers = #tpu.dot_dimension_numbers<[1], [0], [0], [1], [0, 0, 1, 1], [], []>} : vector<64x144xbf16>, vector<144x128xbf16>, vector<64x128xf32> -> vector<64x128xf32>
    %c0_3 = arith.constant 0 : index
    %c0_4 = arith.constant 0 : index
    %3 = vector.load %arg3[%c0_3, %c0_4] : memref<1x128xf32, #tpu.memory_space<vmem>>, vector<1x128xf32>
    %4 = vector.broadcast %3 : vector<1x128xf32> to vector<64x128xf32>
    %5 = arith.addf %2, %4 : vector<64x128xf32>
    %cst_5 = arith.constant 0.000000e+00 : f32
    %6 = vector.broadcast %cst_5 : f32 to vector<64x128xf32>
    %7 = arith.maximumf %5, %6 : vector<64x128xf32>
    %8 = arith.truncf %7 : vector<64x128xf32> to vector<64x128xbf16>
    %c0_6 = arith.constant 0 : index
    %c0_7 = arith.constant 0 : index
    %9 = vector.load %arg4[%c0_6, %c0_7] : memref<64x128xbf16, #tpu.memory_space<vmem>>, vector<64x128xbf16>
    tpu.vector_store %arg4[%c0_6, %c0_7], %8 {strides = array<i32>} : memref<64x128xbf16, #tpu.memory_space<vmem>>, vector<64x128xbf16>,
    return
  }
  func.func @transform_0(%arg0: i32) -> (i32, i32) {
    %c0_i32 = arith.constant 0 : i32
    %c0_i32_0 = arith.constant 0 : i32
    return %arg0, %c0_i32 : i32, i32
  }
  func.func @transform_1(%arg0: i32) -> (i32, i32) {
    %c0_i32 = arith.constant 0 : i32
    %c0_i32_0 = arith.constant 0 : i32
    %c0_i32_1 = arith.constant 0 : i32
    return %c0_i32, %c0_i32_0 : i32, i32
  }
  func.func @transform_2(%arg0: i32) -> (i32, i32) {
    %c0_i32 = arith.constant 0 : i32
    %c0_i32_0 = arith.constant 0 : i32
    %c0_i32_1 = arith.constant 0 : i32
    return %c0_i32, %c0_i32_0 : i32, i32
  }
  func.func @transform_3(%arg0: i32) -> (i32, i32) {
    %c0_i32 = arith.constant 0 : i32
    %c0_i32_0 = arith.constant 0 : i32
    return %arg0, %c0_i32 : i32, i32
  }
}

module attributes {stable_mosaic.version = 11 : i64} {
  func.func @_conv_mm_kernel(%arg0: i32, %arg1: memref<16x288xbf16, #tpu.memory_space<vmem>>, %arg2: memref<288x128xbf16, #tpu.memory_space<vmem>>, %arg3: memref<1x128xf32, #tpu.memory_space<vmem>>, %arg4: memref<16x128xbf16, #tpu.memory_space<vmem>>) attributes {dimension_semantics = [#tpu.dimension_semantics<parallel>], iteration_bounds = array<i64: 2>, scalar_prefetch = 0 : i64, scratch_operands = 0 : i64, tpu.core_type = #tpu.core_type<tc>, window_params = [{transform_indices = @transform_0, window_bounds = array<i64: 16, 288>}, {pipeline_mode = #tpu.pipeline_mode<synchronous>, transform_indices = @transform_1, window_bounds = array<i64: 288, 128>}, {pipeline_mode = #tpu.pipeline_mode<synchronous>, transform_indices = @transform_2, window_bounds = array<i64: 1, 128>}, {transform_indices = @transform_3, window_bounds = array<i64: 16, 128>}]} {
    %c0 = arith.constant 0 : index
    %c0_0 = arith.constant 0 : index
    %0 = vector.load %arg1[%c0, %c0_0] : memref<16x288xbf16, #tpu.memory_space<vmem>>, vector<16x288xbf16>
    %c0_1 = arith.constant 0 : index
    %c0_2 = arith.constant 0 : index
    %1 = vector.load %arg2[%c0_1, %c0_2] : memref<288x128xbf16, #tpu.memory_space<vmem>>, vector<288x128xbf16>
    %cst = arith.constant dense<0.000000e+00> : vector<16x128xf32>
    %2 = tpu.matmul %0, %1, %cst {dimension_numbers = #tpu.dot_dimension_numbers<[1], [0], [0], [1], [0, 0, 1, 1], [], []>} : vector<16x288xbf16>, vector<288x128xbf16>, vector<16x128xf32> -> vector<16x128xf32>
    %c0_3 = arith.constant 0 : index
    %c0_4 = arith.constant 0 : index
    %3 = vector.load %arg3[%c0_3, %c0_4] : memref<1x128xf32, #tpu.memory_space<vmem>>, vector<1x128xf32>
    %4 = vector.broadcast %3 : vector<1x128xf32> to vector<16x128xf32>
    %5 = arith.addf %2, %4 : vector<16x128xf32>
    %cst_5 = arith.constant 0.000000e+00 : f32
    %6 = vector.broadcast %cst_5 : f32 to vector<16x128xf32>
    %7 = arith.maximumf %5, %6 : vector<16x128xf32>
    %8 = arith.truncf %7 : vector<16x128xf32> to vector<16x128xbf16>
    %c0_6 = arith.constant 0 : index
    %c0_7 = arith.constant 0 : index
    %9 = vector.load %arg4[%c0_6, %c0_7] : memref<16x128xbf16, #tpu.memory_space<vmem>>, vector<16x128xbf16>
    tpu.vector_store %arg4[%c0_6, %c0_7], %8 {strides = array<i32>} : memref<16x128xbf16, #tpu.memory_space<vmem>>, vector<16x128xbf16>,
    return
  }
  func.func @transform_0(%arg0: i32) -> (i32, i32) {
    %c0_i32 = arith.constant 0 : i32
    %c0_i32_0 = arith.constant 0 : i32
    return %arg0, %c0_i32 : i32, i32
  }
  func.func @transform_1(%arg0: i32) -> (i32, i32) {
    %c0_i32 = arith.constant 0 : i32
    %c0_i32_0 = arith.constant 0 : i32
    %c0_i32_1 = arith.constant 0 : i32
    return %c0_i32, %c0_i32_0 : i32, i32
  }
  func.func @transform_2(%arg0: i32) -> (i32, i32) {
    %c0_i32 = arith.constant 0 : i32
    %c0_i32_0 = arith.constant 0 : i32
    %c0_i32_1 = arith.constant 0 : i32
    return %c0_i32, %c0_i32_0 : i32, i32
  }
  func.func @transform_3(%arg0: i32) -> (i32, i32) {
    %c0_i32 = arith.constant 0 : i32
    %c0_i32_0 = arith.constant 0 : i32
    return %arg0, %c0_i32 : i32, i32
  }
}

module attributes {stable_mosaic.version = 11 : i64} {
  func.func @_conv_mm_kernel(%arg0: i32, %arg1: memref<16x576xbf16, #tpu.memory_space<vmem>>, %arg2: memref<576x128xbf16, #tpu.memory_space<vmem>>, %arg3: memref<1x128xf32, #tpu.memory_space<vmem>>, %arg4: memref<16x128xbf16, #tpu.memory_space<vmem>>) attributes {dimension_semantics = [#tpu.dimension_semantics<parallel>], iteration_bounds = array<i64: 1>, scalar_prefetch = 0 : i64, scratch_operands = 0 : i64, tpu.core_type = #tpu.core_type<tc>, window_params = [{transform_indices = @transform_0, window_bounds = array<i64: 16, 576>}, {pipeline_mode = #tpu.pipeline_mode<synchronous>, transform_indices = @transform_1, window_bounds = array<i64: 576, 128>}, {pipeline_mode = #tpu.pipeline_mode<synchronous>, transform_indices = @transform_2, window_bounds = array<i64: 1, 128>}, {transform_indices = @transform_3, window_bounds = array<i64: 16, 128>}]} {
    %c0 = arith.constant 0 : index
    %c0_0 = arith.constant 0 : index
    %0 = vector.load %arg1[%c0, %c0_0] : memref<16x576xbf16, #tpu.memory_space<vmem>>, vector<16x576xbf16>
    %c0_1 = arith.constant 0 : index
    %c0_2 = arith.constant 0 : index
    %1 = vector.load %arg2[%c0_1, %c0_2] : memref<576x128xbf16, #tpu.memory_space<vmem>>, vector<576x128xbf16>
    %cst = arith.constant dense<0.000000e+00> : vector<16x128xf32>
    %2 = tpu.matmul %0, %1, %cst {dimension_numbers = #tpu.dot_dimension_numbers<[1], [0], [0], [1], [0, 0, 1, 1], [], []>} : vector<16x576xbf16>, vector<576x128xbf16>, vector<16x128xf32> -> vector<16x128xf32>
    %c0_3 = arith.constant 0 : index
    %c0_4 = arith.constant 0 : index
    %3 = vector.load %arg3[%c0_3, %c0_4] : memref<1x128xf32, #tpu.memory_space<vmem>>, vector<1x128xf32>
    %4 = vector.broadcast %3 : vector<1x128xf32> to vector<16x128xf32>
    %5 = arith.addf %2, %4 : vector<16x128xf32>
    %cst_5 = arith.constant 0.000000e+00 : f32
    %6 = vector.broadcast %cst_5 : f32 to vector<16x128xf32>
    %7 = arith.maximumf %5, %6 : vector<16x128xf32>
    %8 = arith.truncf %7 : vector<16x128xf32> to vector<16x128xbf16>
    %c0_6 = arith.constant 0 : index
    %c0_7 = arith.constant 0 : index
    %9 = vector.load %arg4[%c0_6, %c0_7] : memref<16x128xbf16, #tpu.memory_space<vmem>>, vector<16x128xbf16>
    tpu.vector_store %arg4[%c0_6, %c0_7], %8 {strides = array<i32>} : memref<16x128xbf16, #tpu.memory_space<vmem>>, vector<16x128xbf16>,
    return
  }
  func.func @transform_0(%arg0: i32) -> (i32, i32) {
    %c0_i32 = arith.constant 0 : i32
    %c0_i32_0 = arith.constant 0 : i32
    return %arg0, %c0_i32 : i32, i32
  }
  func.func @transform_1(%arg0: i32) -> (i32, i32) {
    %c0_i32 = arith.constant 0 : i32
    %c0_i32_0 = arith.constant 0 : i32
    %c0_i32_1 = arith.constant 0 : i32
    return %c0_i32, %c0_i32_0 : i32, i32
  }
  func.func @transform_2(%arg0: i32) -> (i32, i32) {
    %c0_i32 = arith.constant 0 : i32
    %c0_i32_0 = arith.constant 0 : i32
    %c0_i32_1 = arith.constant 0 : i32
    return %c0_i32, %c0_i32_0 : i32, i32
  }
  func.func @transform_3(%arg0: i32) -> (i32, i32) {
    %c0_i32 = arith.constant 0 : i32
    %c0_i32_0 = arith.constant 0 : i32
    return %arg0, %c0_i32 : i32, i32
  }
}

module attributes {stable_mosaic.version = 11 : i64} {
  func.func @_conv_mm_kernel(%arg0: i32, %arg1: memref<16x432xbf16, #tpu.memory_space<vmem>>, %arg2: memref<432x128xbf16, #tpu.memory_space<vmem>>, %arg3: memref<1x128xf32, #tpu.memory_space<vmem>>, %arg4: memref<16x128xbf16, #tpu.memory_space<vmem>>) attributes {dimension_semantics = [#tpu.dimension_semantics<parallel>], iteration_bounds = array<i64: 1>, scalar_prefetch = 0 : i64, scratch_operands = 0 : i64, tpu.core_type = #tpu.core_type<tc>, window_params = [{transform_indices = @transform_0, window_bounds = array<i64: 16, 432>}, {pipeline_mode = #tpu.pipeline_mode<synchronous>, transform_indices = @transform_1, window_bounds = array<i64: 432, 128>}, {pipeline_mode = #tpu.pipeline_mode<synchronous>, transform_indices = @transform_2, window_bounds = array<i64: 1, 128>}, {transform_indices = @transform_3, window_bounds = array<i64: 16, 128>}]} {
    %c0 = arith.constant 0 : index
    %c0_0 = arith.constant 0 : index
    %0 = vector.load %arg1[%c0, %c0_0] : memref<16x432xbf16, #tpu.memory_space<vmem>>, vector<16x432xbf16>
    %c0_1 = arith.constant 0 : index
    %c0_2 = arith.constant 0 : index
    %1 = vector.load %arg2[%c0_1, %c0_2] : memref<432x128xbf16, #tpu.memory_space<vmem>>, vector<432x128xbf16>
    %cst = arith.constant dense<0.000000e+00> : vector<16x128xf32>
    %2 = tpu.matmul %0, %1, %cst {dimension_numbers = #tpu.dot_dimension_numbers<[1], [0], [0], [1], [0, 0, 1, 1], [], []>} : vector<16x432xbf16>, vector<432x128xbf16>, vector<16x128xf32> -> vector<16x128xf32>
    %c0_3 = arith.constant 0 : index
    %c0_4 = arith.constant 0 : index
    %3 = vector.load %arg3[%c0_3, %c0_4] : memref<1x128xf32, #tpu.memory_space<vmem>>, vector<1x128xf32>
    %4 = vector.broadcast %3 : vector<1x128xf32> to vector<16x128xf32>
    %5 = arith.addf %2, %4 : vector<16x128xf32>
    %cst_5 = arith.constant 0.000000e+00 : f32
    %6 = vector.broadcast %cst_5 : f32 to vector<16x128xf32>
    %7 = arith.maximumf %5, %6 : vector<16x128xf32>
    %8 = arith.truncf %7 : vector<16x128xf32> to vector<16x128xbf16>
    %c0_6 = arith.constant 0 : index
    %c0_7 = arith.constant 0 : index
    %9 = vector.load %arg4[%c0_6, %c0_7] : memref<16x128xbf16, #tpu.memory_space<vmem>>, vector<16x128xbf16>
    tpu.vector_store %arg4[%c0_6, %c0_7], %8 {strides = array<i32>} : memref<16x128xbf16, #tpu.memory_space<vmem>>, vector<16x128xbf16>,
    return
  }
  func.func @transform_0(%arg0: i32) -> (i32, i32) {
    %c0_i32 = arith.constant 0 : i32
    %c0_i32_0 = arith.constant 0 : i32
    return %arg0, %c0_i32 : i32, i32
  }
  func.func @transform_1(%arg0: i32) -> (i32, i32) {
    %c0_i32 = arith.constant 0 : i32
    %c0_i32_0 = arith.constant 0 : i32
    %c0_i32_1 = arith.constant 0 : i32
    return %c0_i32, %c0_i32_0 : i32, i32
  }
  func.func @transform_2(%arg0: i32) -> (i32, i32) {
    %c0_i32 = arith.constant 0 : i32
    %c0_i32_0 = arith.constant 0 : i32
    %c0_i32_1 = arith.constant 0 : i32
    return %c0_i32, %c0_i32_0 : i32, i32
  }
  func.func @transform_3(%arg0: i32) -> (i32, i32) {
    %c0_i32 = arith.constant 0 : i32
    %c0_i32_0 = arith.constant 0 : i32
    return %arg0, %c0_i32 : i32, i32
  }
}

module attributes {stable_mosaic.version = 11 : i64} {
  func.func @kernel(%arg0: i32, %arg1: memref<16x128xbf16, #tpu.memory_space<vmem>>, %arg2: memref<128x256xbf16, #tpu.memory_space<vmem>>, %arg3: memref<1x256xf32, #tpu.memory_space<vmem>>, %arg4: memref<128x128xf32, #tpu.memory_space<vmem>>, %arg5: memref<16x128xf32, #tpu.memory_space<vmem>>) attributes {dimension_semantics = [#tpu.dimension_semantics<parallel>], iteration_bounds = array<i64: 1>, scalar_prefetch = 0 : i64, scratch_operands = 0 : i64, tpu.core_type = #tpu.core_type<tc>, window_params = [{transform_indices = @transform_0, window_bounds = array<i64: 16, 128>}, {pipeline_mode = #tpu.pipeline_mode<synchronous>, transform_indices = @transform_1, window_bounds = array<i64: 128, 256>}, {pipeline_mode = #tpu.pipeline_mode<synchronous>, transform_indices = @transform_2, window_bounds = array<i64: 1, 256>}, {pipeline_mode = #tpu.pipeline_mode<synchronous>, transform_indices = @transform_3, window_bounds = array<i64: 128, 128>}, {transform_indices = @transform_4, window_bounds = array<i64: 16, 128>}]} {
    %c0 = arith.constant 0 : index
    %c0_0 = arith.constant 0 : index
    %0 = vector.load %arg1[%c0, %c0_0] : memref<16x128xbf16, #tpu.memory_space<vmem>>, vector<16x128xbf16>
    %c0_1 = arith.constant 0 : index
    %c0_2 = arith.constant 0 : index
    %1 = vector.load %arg2[%c0_1, %c0_2] : memref<128x256xbf16, #tpu.memory_space<vmem>>, vector<128x256xbf16>
    %cst = arith.constant dense<0.000000e+00> : vector<16x256xf32>
    %2 = tpu.matmul %0, %1, %cst {dimension_numbers = #tpu.dot_dimension_numbers<[1], [0], [0], [1], [0, 0, 1, 1], [], []>} : vector<16x128xbf16>, vector<128x256xbf16>, vector<16x256xf32> -> vector<16x256xf32>
    %c0_3 = arith.constant 0 : index
    %c0_4 = arith.constant 0 : index
    %3 = vector.load %arg3[%c0_3, %c0_4] : memref<1x256xf32, #tpu.memory_space<vmem>>, vector<1x256xf32>
    %4 = vector.broadcast %3 : vector<1x256xf32> to vector<16x256xf32>
    %5 = arith.addf %2, %4 : vector<16x256xf32>
    %6 = vector.extract_strided_slice %5 {offsets = [0, 128], sizes = [16, 68], strides = [1, 1]} : vector<16x256xf32> to vector<16x68xf32>
    %7 = vector.extract_strided_slice %5 {offsets = [0, 128], sizes = [16, 128], strides = [1, 1]} : vector<16x256xf32> to vector<16x128xf32>
    %cst_5 = arith.constant dense<0xFF800000> : vector<16xf32>
    %8 = vector.multi_reduction <maximumf>, %6, %cst_5 [1] : vector<16x68xf32> to vector<16xf32>
    %9 = vector.shape_cast %8 : vector<16xf32> to vector<16x1xf32>
    %10 = vector.broadcast %9 : vector<16x1xf32> to vector<16x128xf32>
    %11 = arith.subf %7, %10 : vector<16x128xf32>
    %cst_6 = arith.constant 0.000000e+00 : f32
    %12 = vector.broadcast %cst_6 : f32 to vector<16x128xf32>
    %13 = arith.minimumf %11, %12 : vector<16x128xf32>
    %14 = math.exp %13 : vector<16x128xf32>
    %c0_7 = arith.constant 0 : index
    %c0_8 = arith.constant 0 : index
    %15 = vector.load %arg4[%c0_7, %c0_8] : memref<128x128xf32, #tpu.memory_space<vmem>>, vector<128x128xf32>
    %cst_9 = arith.constant dense<0.000000e+00> : vector<16x128xf32>
    %16 = tpu.matmul %14, %15, %cst_9 {dimension_numbers = #tpu.dot_dimension_numbers<[1], [0], [0], [1], [0, 0, 1, 1], [], []>} : vector<16x128xf32>, vector<128x128xf32>, vector<16x128xf32> -> vector<16x128xf32>
    %17 = vector.extract_strided_slice %16 {offsets = [0, 0], sizes = [16, 4], strides = [1, 1]} : vector<16x128xf32> to vector<16x4xf32>
    %18 = vector.extract_strided_slice %16 {offsets = [0, 4], sizes = [16, 4], strides = [1, 1]} : vector<16x128xf32> to vector<16x4xf32>
    %19 = tpu.reciprocal %17 {approx = true} : vector<16x4xf32> -> vector<16x4xf32>
    %20 = arith.mulf %18, %19 : vector<16x4xf32>
    %c16_i32 = arith.constant 16 : i32
    %21 = arith.muli %arg0, %c16_i32 : i32
    %22 = arith.sitofp %21 : i32 to f32
    %23 = tpu.iota {dimensions = array<i32: 0>} : vector<16x1xi32>
    %24 = arith.sitofp %23 : vector<16x1xi32> to vector<16x1xf32>
    %25 = vector.broadcast %22 : f32 to vector<16x1xf32>
    %26 = arith.addf %25, %24 : vector<16x1xf32>
    %cst_10 = arith.constant 1.000000e+00 : f32
    %27 = vector.broadcast %cst_10 : f32 to vector<16x1xf32>
    %28 = arith.divf %26, %27 : vector<16x1xf32>
    %29 = math.floor %28 : vector<16x1xf32>
    %cst_11 = arith.constant 1.000000e+00 : f32
    %30 = vector.broadcast %cst_11 : f32 to vector<16x1xf32>
    %31 = arith.mulf %29, %30 : vector<16x1xf32>
    %32 = arith.subf %26, %31 : vector<16x1xf32>
    %cst_12 = arith.constant 1.000000e+00 : f32
    %33 = vector.broadcast %cst_12 : f32 to vector<16x1xf32>
    %34 = arith.divf %32, %33 : vector<16x1xf32>
    %35 = math.floor %34 : vector<16x1xf32>
    %cst_13 = arith.constant 1.000000e+00 : f32
    %36 = vector.broadcast %cst_13 : f32 to vector<16x1xf32>
    %37 = arith.mulf %35, %36 : vector<16x1xf32>
    %38 = arith.subf %32, %37 : vector<16x1xf32>
    %39 = tpu.concatenate %38, %35, %38, %35 in 1 : vector<16x1xf32>, vector<16x1xf32>, vector<16x1xf32>, vector<16x1xf32> -> vector<16x4xf32>
    %cst_14 = arith.constant 5.000000e-01 : f32
    %40 = vector.broadcast %cst_14 : f32 to vector<16x4xf32>
    %41 = arith.addf %39, %40 : vector<16x4xf32>
    %42 = arith.addf %41, %20 : vector<16x4xf32>
    %cst_15 = arith.constant 3.200000e+01 : f32
    %43 = vector.broadcast %cst_15 : f32 to vector<16x4xf32>
    %44 = arith.mulf %42, %43 : vector<16x4xf32>
    %45 = tpu.iota {dimensions = array<i32: 1>} : vector<16x128xi32>
    %46 = vector.extract_strided_slice %5 {offsets = [0, 0], sizes = [16, 128], strides = [1, 1]} : vector<16x256xf32> to vector<16x128xf32>
    %47 = arith.negf %46 : vector<16x128xf32>
    %48 = math.exp %47 : vector<16x128xf32>
    %cst_16 = arith.constant 1.000000e+00 : f32
    %49 = vector.broadcast %cst_16 : f32 to vector<16x128xf32>
    %50 = arith.addf %49, %48 : vector<16x128xf32>
    %51 = arith.divf %49, %50 : vector<16x128xf32>
    %cst_17 = arith.constant 0.000000e+00 : f32
    %52 = vector.broadcast %cst_17 : f32 to vector<16x124xf32>
    %53 = tpu.concatenate %44, %52 in 1 : vector<16x4xf32>, vector<16x124xf32> -> vector<16x128xf32>
    %c4_i32 = arith.constant 4 : i32
    %54 = vector.broadcast %c4_i32 : i32 to vector<16x128xi32>
    %55 = arith.cmpi slt, %45, %54 : vector<16x128xi32>
    %c84_i32 = arith.constant 84 : i32
    %56 = vector.broadcast %c84_i32 : i32 to vector<16x128xi32>
    %57 = arith.cmpi slt, %45, %56 : vector<16x128xi32>
    %cst_18 = arith.constant 0.000000e+00 : f32
    %58 = vector.broadcast %cst_18 : f32 to vector<16x128xf32>
    %59 = arith.select %57, %51, %58 : vector<16x128xi1>, vector<16x128xf32>
    %60 = arith.select %55, %53, %59 : vector<16x128xi1>, vector<16x128xf32>
    %c0_19 = arith.constant 0 : index
    %c0_20 = arith.constant 0 : index
    %61 = vector.load %arg5[%c0_19, %c0_20] : memref<16x128xf32, #tpu.memory_space<vmem>>, vector<16x128xf32>
    tpu.vector_store %arg5[%c0_19, %c0_20], %60 {strides = array<i32>} : memref<16x128xf32, #tpu.memory_space<vmem>>, vector<16x128xf32>,
    return
  }
  func.func @transform_0(%arg0: i32) -> (i32, i32) {
    %c0_i32 = arith.constant 0 : i32
    %c0_i32_0 = arith.constant 0 : i32
    return %arg0, %c0_i32 : i32, i32
  }
  func.func @transform_1(%arg0: i32) -> (i32, i32) {
    %c0_i32 = arith.constant 0 : i32
    %c0_i32_0 = arith.constant 0 : i32
    %c0_i32_1 = arith.constant 0 : i32
    return %c0_i32, %c0_i32_0 : i32, i32
  }
  func.func @transform_2(%arg0: i32) -> (i32, i32) {
    %c0_i32 = arith.constant 0 : i32
    %c0_i32_0 = arith.constant 0 : i32
    %c0_i32_1 = arith.constant 0 : i32
    return %c0_i32, %c0_i32_0 : i32, i32
  }
  func.func @transform_3(%arg0: i32) -> (i32, i32) {
    %c0_i32 = arith.constant 0 : i32
    %c0_i32_0 = arith.constant 0 : i32
    %c0_i32_1 = arith.constant 0 : i32
    return %c0_i32, %c0_i32_0 : i32, i32
  }
  func.func @transform_4(%arg0: i32) -> (i32, i32) {
    %c0_i32 = arith.constant 0 : i32
    %c0_i32_0 = arith.constant 0 : i32
    return %arg0, %c0_i32 : i32, i32
  }
}

module attributes {stable_mosaic.version = 11 : i64} {
  func.func @kernel(%arg0: i32, %arg1: memref<16x128xbf16, #tpu.memory_space<vmem>>, %arg2: memref<128x256xbf16, #tpu.memory_space<vmem>>, %arg3: memref<1x256xf32, #tpu.memory_space<vmem>>, %arg4: memref<128x128xf32, #tpu.memory_space<vmem>>, %arg5: memref<16x128xf32, #tpu.memory_space<vmem>>) attributes {dimension_semantics = [#tpu.dimension_semantics<parallel>], iteration_bounds = array<i64: 1>, scalar_prefetch = 0 : i64, scratch_operands = 0 : i64, tpu.core_type = #tpu.core_type<tc>, window_params = [{transform_indices = @transform_0, window_bounds = array<i64: 16, 128>}, {pipeline_mode = #tpu.pipeline_mode<synchronous>, transform_indices = @transform_1, window_bounds = array<i64: 128, 256>}, {pipeline_mode = #tpu.pipeline_mode<synchronous>, transform_indices = @transform_2, window_bounds = array<i64: 1, 256>}, {pipeline_mode = #tpu.pipeline_mode<synchronous>, transform_indices = @transform_3, window_bounds = array<i64: 128, 128>}, {transform_indices = @transform_4, window_bounds = array<i64: 16, 128>}]} {
    %c0 = arith.constant 0 : index
    %c0_0 = arith.constant 0 : index
    %0 = vector.load %arg1[%c0, %c0_0] : memref<16x128xbf16, #tpu.memory_space<vmem>>, vector<16x128xbf16>
    %c0_1 = arith.constant 0 : index
    %c0_2 = arith.constant 0 : index
    %1 = vector.load %arg2[%c0_1, %c0_2] : memref<128x256xbf16, #tpu.memory_space<vmem>>, vector<128x256xbf16>
    %cst = arith.constant dense<0.000000e+00> : vector<16x256xf32>
    %2 = tpu.matmul %0, %1, %cst {dimension_numbers = #tpu.dot_dimension_numbers<[1], [0], [0], [1], [0, 0, 1, 1], [], []>} : vector<16x128xbf16>, vector<128x256xbf16>, vector<16x256xf32> -> vector<16x256xf32>
    %c0_3 = arith.constant 0 : index
    %c0_4 = arith.constant 0 : index
    %3 = vector.load %arg3[%c0_3, %c0_4] : memref<1x256xf32, #tpu.memory_space<vmem>>, vector<1x256xf32>
    %4 = vector.broadcast %3 : vector<1x256xf32> to vector<16x256xf32>
    %5 = arith.addf %2, %4 : vector<16x256xf32>
    %6 = vector.extract_strided_slice %5 {offsets = [0, 128], sizes = [16, 68], strides = [1, 1]} : vector<16x256xf32> to vector<16x68xf32>
    %7 = vector.extract_strided_slice %5 {offsets = [0, 128], sizes = [16, 128], strides = [1, 1]} : vector<16x256xf32> to vector<16x128xf32>
    %cst_5 = arith.constant dense<0xFF800000> : vector<16xf32>
    %8 = vector.multi_reduction <maximumf>, %6, %cst_5 [1] : vector<16x68xf32> to vector<16xf32>
    %9 = vector.shape_cast %8 : vector<16xf32> to vector<16x1xf32>
    %10 = vector.broadcast %9 : vector<16x1xf32> to vector<16x128xf32>
    %11 = arith.subf %7, %10 : vector<16x128xf32>
    %cst_6 = arith.constant 0.000000e+00 : f32
    %12 = vector.broadcast %cst_6 : f32 to vector<16x128xf32>
    %13 = arith.minimumf %11, %12 : vector<16x128xf32>
    %14 = math.exp %13 : vector<16x128xf32>
    %c0_7 = arith.constant 0 : index
    %c0_8 = arith.constant 0 : index
    %15 = vector.load %arg4[%c0_7, %c0_8] : memref<128x128xf32, #tpu.memory_space<vmem>>, vector<128x128xf32>
    %cst_9 = arith.constant dense<0.000000e+00> : vector<16x128xf32>
    %16 = tpu.matmul %14, %15, %cst_9 {dimension_numbers = #tpu.dot_dimension_numbers<[1], [0], [0], [1], [0, 0, 1, 1], [], []>} : vector<16x128xf32>, vector<128x128xf32>, vector<16x128xf32> -> vector<16x128xf32>
    %17 = vector.extract_strided_slice %16 {offsets = [0, 0], sizes = [16, 4], strides = [1, 1]} : vector<16x128xf32> to vector<16x4xf32>
    %18 = vector.extract_strided_slice %16 {offsets = [0, 4], sizes = [16, 4], strides = [1, 1]} : vector<16x128xf32> to vector<16x4xf32>
    %19 = tpu.reciprocal %17 {approx = true} : vector<16x4xf32> -> vector<16x4xf32>
    %20 = arith.mulf %18, %19 : vector<16x4xf32>
    %c16_i32 = arith.constant 16 : i32
    %21 = arith.muli %arg0, %c16_i32 : i32
    %22 = arith.sitofp %21 : i32 to f32
    %23 = tpu.iota {dimensions = array<i32: 0>} : vector<16x1xi32>
    %24 = arith.sitofp %23 : vector<16x1xi32> to vector<16x1xf32>
    %25 = vector.broadcast %22 : f32 to vector<16x1xf32>
    %26 = arith.addf %25, %24 : vector<16x1xf32>
    %cst_10 = arith.constant 4.000000e+00 : f32
    %27 = vector.broadcast %cst_10 : f32 to vector<16x1xf32>
    %28 = arith.divf %26, %27 : vector<16x1xf32>
    %29 = math.floor %28 : vector<16x1xf32>
    %cst_11 = arith.constant 4.000000e+00 : f32
    %30 = vector.broadcast %cst_11 : f32 to vector<16x1xf32>
    %31 = arith.mulf %29, %30 : vector<16x1xf32>
    %32 = arith.subf %26, %31 : vector<16x1xf32>
    %cst_12 = arith.constant 2.000000e+00 : f32
    %33 = vector.broadcast %cst_12 : f32 to vector<16x1xf32>
    %34 = arith.divf %32, %33 : vector<16x1xf32>
    %35 = math.floor %34 : vector<16x1xf32>
    %cst_13 = arith.constant 2.000000e+00 : f32
    %36 = vector.broadcast %cst_13 : f32 to vector<16x1xf32>
    %37 = arith.mulf %35, %36 : vector<16x1xf32>
    %38 = arith.subf %32, %37 : vector<16x1xf32>
    %39 = tpu.concatenate %38, %35, %38, %35 in 1 : vector<16x1xf32>, vector<16x1xf32>, vector<16x1xf32>, vector<16x1xf32> -> vector<16x4xf32>
    %cst_14 = arith.constant 5.000000e-01 : f32
    %40 = vector.broadcast %cst_14 : f32 to vector<16x4xf32>
    %41 = arith.addf %39, %40 : vector<16x4xf32>
    %42 = arith.addf %41, %20 : vector<16x4xf32>
    %cst_15 = arith.constant 1.600000e+01 : f32
    %43 = vector.broadcast %cst_15 : f32 to vector<16x4xf32>
    %44 = arith.mulf %42, %43 : vector<16x4xf32>
    %45 = tpu.iota {dimensions = array<i32: 1>} : vector<16x128xi32>
    %46 = vector.extract_strided_slice %5 {offsets = [0, 0], sizes = [16, 128], strides = [1, 1]} : vector<16x256xf32> to vector<16x128xf32>
    %47 = arith.negf %46 : vector<16x128xf32>
    %48 = math.exp %47 : vector<16x128xf32>
    %cst_16 = arith.constant 1.000000e+00 : f32
    %49 = vector.broadcast %cst_16 : f32 to vector<16x128xf32>
    %50 = arith.addf %49, %48 : vector<16x128xf32>
    %51 = arith.divf %49, %50 : vector<16x128xf32>
    %cst_17 = arith.constant 0.000000e+00 : f32
    %52 = vector.broadcast %cst_17 : f32 to vector<16x124xf32>
    %53 = tpu.concatenate %44, %52 in 1 : vector<16x4xf32>, vector<16x124xf32> -> vector<16x128xf32>
    %c4_i32 = arith.constant 4 : i32
    %54 = vector.broadcast %c4_i32 : i32 to vector<16x128xi32>
    %55 = arith.cmpi slt, %45, %54 : vector<16x128xi32>
    %c84_i32 = arith.constant 84 : i32
    %56 = vector.broadcast %c84_i32 : i32 to vector<16x128xi32>
    %57 = arith.cmpi slt, %45, %56 : vector<16x128xi32>
    %cst_18 = arith.constant 0.000000e+00 : f32
    %58 = vector.broadcast %cst_18 : f32 to vector<16x128xf32>
    %59 = arith.select %57, %51, %58 : vector<16x128xi1>, vector<16x128xf32>
    %60 = arith.select %55, %53, %59 : vector<16x128xi1>, vector<16x128xf32>
    %c0_19 = arith.constant 0 : index
    %c0_20 = arith.constant 0 : index
    %61 = vector.load %arg5[%c0_19, %c0_20] : memref<16x128xf32, #tpu.memory_space<vmem>>, vector<16x128xf32>
    tpu.vector_store %arg5[%c0_19, %c0_20], %60 {strides = array<i32>} : memref<16x128xf32, #tpu.memory_space<vmem>>, vector<16x128xf32>,
    return
  }
  func.func @transform_0(%arg0: i32) -> (i32, i32) {
    %c0_i32 = arith.constant 0 : i32
    %c0_i32_0 = arith.constant 0 : i32
    return %arg0, %c0_i32 : i32, i32
  }
  func.func @transform_1(%arg0: i32) -> (i32, i32) {
    %c0_i32 = arith.constant 0 : i32
    %c0_i32_0 = arith.constant 0 : i32
    %c0_i32_1 = arith.constant 0 : i32
    return %c0_i32, %c0_i32_0 : i32, i32
  }
  func.func @transform_2(%arg0: i32) -> (i32, i32) {
    %c0_i32 = arith.constant 0 : i32
    %c0_i32_0 = arith.constant 0 : i32
    %c0_i32_1 = arith.constant 0 : i32
    return %c0_i32, %c0_i32_0 : i32, i32
  }
  func.func @transform_3(%arg0: i32) -> (i32, i32) {
    %c0_i32 = arith.constant 0 : i32
    %c0_i32_0 = arith.constant 0 : i32
    %c0_i32_1 = arith.constant 0 : i32
    return %c0_i32, %c0_i32_0 : i32, i32
  }
  func.func @transform_4(%arg0: i32) -> (i32, i32) {
    %c0_i32 = arith.constant 0 : i32
    %c0_i32_0 = arith.constant 0 : i32
    return %arg0, %c0_i32 : i32, i32
  }
}

module attributes {stable_mosaic.version = 11 : i64} {
  func.func @kernel(%arg0: i32, %arg1: memref<16x128xbf16, #tpu.memory_space<vmem>>, %arg2: memref<128x256xbf16, #tpu.memory_space<vmem>>, %arg3: memref<1x256xf32, #tpu.memory_space<vmem>>, %arg4: memref<128x128xf32, #tpu.memory_space<vmem>>, %arg5: memref<16x128xf32, #tpu.memory_space<vmem>>) attributes {dimension_semantics = [#tpu.dimension_semantics<parallel>], iteration_bounds = array<i64: 2>, scalar_prefetch = 0 : i64, scratch_operands = 0 : i64, tpu.core_type = #tpu.core_type<tc>, window_params = [{transform_indices = @transform_0, window_bounds = array<i64: 16, 128>}, {pipeline_mode = #tpu.pipeline_mode<synchronous>, transform_indices = @transform_1, window_bounds = array<i64: 128, 256>}, {pipeline_mode = #tpu.pipeline_mode<synchronous>, transform_indices = @transform_2, window_bounds = array<i64: 1, 256>}, {pipeline_mode = #tpu.pipeline_mode<synchronous>, transform_indices = @transform_3, window_bounds = array<i64: 128, 128>}, {transform_indices = @transform_4, window_bounds = array<i64: 16, 128>}]} {
    %c0 = arith.constant 0 : index
    %c0_0 = arith.constant 0 : index
    %0 = vector.load %arg1[%c0, %c0_0] : memref<16x128xbf16, #tpu.memory_space<vmem>>, vector<16x128xbf16>
    %c0_1 = arith.constant 0 : index
    %c0_2 = arith.constant 0 : index
    %1 = vector.load %arg2[%c0_1, %c0_2] : memref<128x256xbf16, #tpu.memory_space<vmem>>, vector<128x256xbf16>
    %cst = arith.constant dense<0.000000e+00> : vector<16x256xf32>
    %2 = tpu.matmul %0, %1, %cst {dimension_numbers = #tpu.dot_dimension_numbers<[1], [0], [0], [1], [0, 0, 1, 1], [], []>} : vector<16x128xbf16>, vector<128x256xbf16>, vector<16x256xf32> -> vector<16x256xf32>
    %c0_3 = arith.constant 0 : index
    %c0_4 = arith.constant 0 : index
    %3 = vector.load %arg3[%c0_3, %c0_4] : memref<1x256xf32, #tpu.memory_space<vmem>>, vector<1x256xf32>
    %4 = vector.broadcast %3 : vector<1x256xf32> to vector<16x256xf32>
    %5 = arith.addf %2, %4 : vector<16x256xf32>
    %6 = vector.extract_strided_slice %5 {offsets = [0, 128], sizes = [16, 68], strides = [1, 1]} : vector<16x256xf32> to vector<16x68xf32>
    %7 = vector.extract_strided_slice %5 {offsets = [0, 128], sizes = [16, 128], strides = [1, 1]} : vector<16x256xf32> to vector<16x128xf32>
    %cst_5 = arith.constant dense<0xFF800000> : vector<16xf32>
    %8 = vector.multi_reduction <maximumf>, %6, %cst_5 [1] : vector<16x68xf32> to vector<16xf32>
    %9 = vector.shape_cast %8 : vector<16xf32> to vector<16x1xf32>
    %10 = vector.broadcast %9 : vector<16x1xf32> to vector<16x128xf32>
    %11 = arith.subf %7, %10 : vector<16x128xf32>
    %cst_6 = arith.constant 0.000000e+00 : f32
    %12 = vector.broadcast %cst_6 : f32 to vector<16x128xf32>
    %13 = arith.minimumf %11, %12 : vector<16x128xf32>
    %14 = math.exp %13 : vector<16x128xf32>
    %c0_7 = arith.constant 0 : index
    %c0_8 = arith.constant 0 : index
    %15 = vector.load %arg4[%c0_7, %c0_8] : memref<128x128xf32, #tpu.memory_space<vmem>>, vector<128x128xf32>
    %cst_9 = arith.constant dense<0.000000e+00> : vector<16x128xf32>
    %16 = tpu.matmul %14, %15, %cst_9 {dimension_numbers = #tpu.dot_dimension_numbers<[1], [0], [0], [1], [0, 0, 1, 1], [], []>} : vector<16x128xf32>, vector<128x128xf32>, vector<16x128xf32> -> vector<16x128xf32>
    %17 = vector.extract_strided_slice %16 {offsets = [0, 0], sizes = [16, 4], strides = [1, 1]} : vector<16x128xf32> to vector<16x4xf32>
    %18 = vector.extract_strided_slice %16 {offsets = [0, 4], sizes = [16, 4], strides = [1, 1]} : vector<16x128xf32> to vector<16x4xf32>
    %19 = tpu.reciprocal %17 {approx = true} : vector<16x4xf32> -> vector<16x4xf32>
    %20 = arith.mulf %18, %19 : vector<16x4xf32>
    %c16_i32 = arith.constant 16 : i32
    %21 = arith.muli %arg0, %c16_i32 : i32
    %22 = arith.sitofp %21 : i32 to f32
    %23 = tpu.iota {dimensions = array<i32: 0>} : vector<16x1xi32>
    %24 = arith.sitofp %23 : vector<16x1xi32> to vector<16x1xf32>
    %25 = vector.broadcast %22 : f32 to vector<16x1xf32>
    %26 = arith.addf %25, %24 : vector<16x1xf32>
    %cst_10 = arith.constant 1.600000e+01 : f32
    %27 = vector.broadcast %cst_10 : f32 to vector<16x1xf32>
    %28 = arith.divf %26, %27 : vector<16x1xf32>
    %29 = math.floor %28 : vector<16x1xf32>
    %cst_11 = arith.constant 1.600000e+01 : f32
    %30 = vector.broadcast %cst_11 : f32 to vector<16x1xf32>
    %31 = arith.mulf %29, %30 : vector<16x1xf32>
    %32 = arith.subf %26, %31 : vector<16x1xf32>
    %cst_12 = arith.constant 4.000000e+00 : f32
    %33 = vector.broadcast %cst_12 : f32 to vector<16x1xf32>
    %34 = arith.divf %32, %33 : vector<16x1xf32>
    %35 = math.floor %34 : vector<16x1xf32>
    %cst_13 = arith.constant 4.000000e+00 : f32
    %36 = vector.broadcast %cst_13 : f32 to vector<16x1xf32>
    %37 = arith.mulf %35, %36 : vector<16x1xf32>
    %38 = arith.subf %32, %37 : vector<16x1xf32>
    %39 = tpu.concatenate %38, %35, %38, %35 in 1 : vector<16x1xf32>, vector<16x1xf32>, vector<16x1xf32>, vector<16x1xf32> -> vector<16x4xf32>
    %cst_14 = arith.constant 5.000000e-01 : f32
    %40 = vector.broadcast %cst_14 : f32 to vector<16x4xf32>
    %41 = arith.addf %39, %40 : vector<16x4xf32>
    %42 = arith.addf %41, %20 : vector<16x4xf32>
    %cst_15 = arith.constant 8.000000e+00 : f32
    %43 = vector.broadcast %cst_15 : f32 to vector<16x4xf32>
    %44 = arith.mulf %42, %43 : vector<16x4xf32>
    %45 = tpu.iota {dimensions = array<i32: 1>} : vector<16x128xi32>
    %46 = vector.extract_strided_slice %5 {offsets = [0, 0], sizes = [16, 128], strides = [1, 1]} : vector<16x256xf32> to vector<16x128xf32>
    %47 = arith.negf %46 : vector<16x128xf32>
    %48 = math.exp %47 : vector<16x128xf32>
    %cst_16 = arith.constant 1.000000e+00 : f32
    %49 = vector.broadcast %cst_16 : f32 to vector<16x128xf32>
    %50 = arith.addf %49, %48 : vector<16x128xf32>
    %51 = arith.divf %49, %50 : vector<16x128xf32>
    %cst_17 = arith.constant 0.000000e+00 : f32
    %52 = vector.broadcast %cst_17 : f32 to vector<16x124xf32>
    %53 = tpu.concatenate %44, %52 in 1 : vector<16x4xf32>, vector<16x124xf32> -> vector<16x128xf32>
    %c4_i32 = arith.constant 4 : i32
    %54 = vector.broadcast %c4_i32 : i32 to vector<16x128xi32>
    %55 = arith.cmpi slt, %45, %54 : vector<16x128xi32>
    %c84_i32 = arith.constant 84 : i32
    %56 = vector.broadcast %c84_i32 : i32 to vector<16x128xi32>
    %57 = arith.cmpi slt, %45, %56 : vector<16x128xi32>
    %cst_18 = arith.constant 0.000000e+00 : f32
    %58 = vector.broadcast %cst_18 : f32 to vector<16x128xf32>
    %59 = arith.select %57, %51, %58 : vector<16x128xi1>, vector<16x128xf32>
    %60 = arith.select %55, %53, %59 : vector<16x128xi1>, vector<16x128xf32>
    %c0_19 = arith.constant 0 : index
    %c0_20 = arith.constant 0 : index
    %61 = vector.load %arg5[%c0_19, %c0_20] : memref<16x128xf32, #tpu.memory_space<vmem>>, vector<16x128xf32>
    tpu.vector_store %arg5[%c0_19, %c0_20], %60 {strides = array<i32>} : memref<16x128xf32, #tpu.memory_space<vmem>>, vector<16x128xf32>,
    return
  }
  func.func @transform_0(%arg0: i32) -> (i32, i32) {
    %c0_i32 = arith.constant 0 : i32
    %c0_i32_0 = arith.constant 0 : i32
    return %arg0, %c0_i32 : i32, i32
  }
  func.func @transform_1(%arg0: i32) -> (i32, i32) {
    %c0_i32 = arith.constant 0 : i32
    %c0_i32_0 = arith.constant 0 : i32
    %c0_i32_1 = arith.constant 0 : i32
    return %c0_i32, %c0_i32_0 : i32, i32
  }
  func.func @transform_2(%arg0: i32) -> (i32, i32) {
    %c0_i32 = arith.constant 0 : i32
    %c0_i32_0 = arith.constant 0 : i32
    %c0_i32_1 = arith.constant 0 : i32
    return %c0_i32, %c0_i32_0 : i32, i32
  }
  func.func @transform_3(%arg0: i32) -> (i32, i32) {
    %c0_i32 = arith.constant 0 : i32
    %c0_i32_0 = arith.constant 0 : i32
    %c0_i32_1 = arith.constant 0 : i32
    return %c0_i32, %c0_i32_0 : i32, i32
  }
  func.func @transform_4(%arg0: i32) -> (i32, i32) {
    %c0_i32 = arith.constant 0 : i32
    %c0_i32_0 = arith.constant 0 : i32
    return %arg0, %c0_i32 : i32, i32
  }
}

</mosaic_0001>

<bundles_post_ra>
// kernel: alpha_yolonas_forward.8
= control target key start
LH: loop header
LB: loop body
LE: loop exit
PB: predicated region body
PF: predicated region fallthrough
CT: control target
= control target key end

     0   :  { %s852_s12 = smov 0   ;;  %s971_s0 = inlined_call_operand.vmem [shape: bf16[512,32], index: 0, kind: input, shape index: {}]   ;;  %s972_s1 = inlined_call_operand.vmem [shape: bf16[32,128], index: 1, kind: input, shape index: {}]   ;;  %s973_s2 = inlined_call_operand.vmem [shape: f32[1,128], index: 2, kind: input, shape index: {}]   ;;  %s974_s3 = inlined_call_operand.vmem [shape: bf16[512,128], index: 3, kind: output, shape index: {}]  }
   0x1 LB: > { %s597_s13 = sadd.s32 4294967295, %s830_s12   ;;  %p601_p0 = scmp.ge.s32.totalorder %s830_s12, 1  ;;  %s830_s12 = sphi %s852_s12, %s13_s12  }
   0x2   : > { %p138_p1 = scmp.lt.s32.totalorder %s830_s12, 3 }
   0x4   : > { %p139_p2 = pnand %p601_p0, %p138_p1 }
   0x5   : > { %s602_s16 = sshll.u32 (!%p139_p2), %s597_s13, 5 }
   0x6   : > { %142 = sbr.rel (%p139_p2) target bundleno = 216 (0xd8), region = 32  ;;  %p163_p3 = scmp.lt.s32.totalorder (!%p139_p2), %s602_s16, 63 }
   0xb   : > { %v713_v0 = vld [vmem:[%s972_s1 + $0x8] sm:$0xff]  ;;  %v712_v1 = vld [vmem:[%s972_s1] sm:$0xff]  ;;  %s976_s16 = smov (!%p163_p3, %s602_s16), 63  ;;  %vm307_vm0 = vcmask 261120  }
   0xc   : > { %362 = vmatpush.bf16.msra.mxu0 %v713_v0  ;;  %809 = vmatpush.bf16.msra.mxu1 %v713_v0  ;;  %s603_s19 = sshll.u32 %s976_s16, 2  ;;  %v911_v20 = vld [vmem:[%s973_s2] ss:$0 sm:$0xff] }
   0xd   : > { %810 = vmatpush.bf16.msra.mxu2 %v713_v0  ;;  %811 = vmatpush.bf16.msra.mxu3 %v713_v0  ;;  %s874_s22 = scalar_lea.vmem %s971_s0, %s603_s19  ;;  %s922_s27 = scalar_lea.vmem %s974_s3, %s603_s19 }
   0xe   : > { %v696_v2 = vld [vmem:[%s874_s22] sm:$0xff]  ;;  %v697_v6 = vld [vmem:[%s874_s22 + $0x8] sm:$0xff]  ;;  %v698_v10 = vld [vmem:[%s874_s22 + $0x10] sm:$0xff] }
   0xf   : > { %v700_v3 = vld [vmem:[%s874_s22 + $0x20] sm:$0xff]  ;;  %v701_v7 = vld [vmem:[%s874_s22 + $0x28] sm:$0xff]  ;;  %v702_v11 = vld [vmem:[%s874_s22 + $0x30] sm:$0xff] }
  0x10   : > { %363 = vmatpush.bf16.msra.mxu0 %v712_v1  ;;  %812 = vmatpush.bf16.msra.mxu1 %v712_v1  ;;  %v704_v4 = vld [vmem:[%s874_s22 + $0x40] sm:$0xff]  ;;  %v705_v8 = vld [vmem:[%s874_s22 + $0x48] sm:$0xff]  ;;  %v706_v12 = vld [vmem:[%s874_s22 + $0x50] sm:$0xff] }
  0x11   : > { %813 = vmatpush.bf16.msra.mxu2 %v712_v1  ;;  %814 = vmatpush.bf16.msra.mxu3 %v712_v1  ;;  %v708_v5 = vld [vmem:[%s874_s22 + $0x60] sm:$0xff]  ;;  %v709_v9 = vld [vmem:[%s874_s22 + $0x68] sm:$0xff]  ;;  %v710_v13 = vld [vmem:[%s874_s22 + $0x70] sm:$0xff] }
  0x12   : > { %v699_v14 = vld [vmem:[%s874_s22 + $0x18] sm:$0xff] }
  0x13   : > { %678 = vmatmul.msk.bf16.vlgmr.msra.gmra.mxu0 %vm307_vm0, %v696_v2  ;;  %682 = vmatmul.msk.bf16.vlgmr.msra.gmra.mxu1 %vm307_vm0, %v700_v3  ;;  %v703_v15 = vld [vmem:[%s874_s22 + $0x38] sm:$0xff] }
  0x14   : > { %686 = vmatmul.msk.bf16.vlgmr.msra.gmra.mxu2 %vm307_vm0, %v704_v4  ;;  %690 = vmatmul.msk.bf16.vlgmr.msra.gmra.mxu3 %vm307_vm0, %v708_v5  ;;  %v707_v16 = vld [vmem:[%s874_s22 + $0x58] sm:$0xff] }
  0x15   : > { %v711_v17 = vld [vmem:[%s874_s22 + $0x78] sm:$0xff] }
  0x23   : > { %679 = vmatmul.msk.bf16.gmra.mxu0 %vm307_vm0, %v697_v6  ;;  %683 = vmatmul.msk.bf16.gmra.mxu1 %vm307_vm0, %v701_v7 }
  0x24   : > { %687 = vmatmul.msk.bf16.gmra.mxu2 %vm307_vm0, %v705_v8  ;;  %691 = vmatmul.msk.bf16.gmra.mxu3 %vm307_vm0, %v709_v9 }
  0x33   : > { %680 = vmatmul.msk.bf16.gmra.mxu0 %vm307_vm0, %v698_v10  ;;  %684 = vmatmul.msk.bf16.gmra.mxu1 %vm307_vm0, %v702_v11 }
  0x34   : > { %688 = vmatmul.msk.bf16.gmra.mxu2 %vm307_vm0, %v706_v12  ;;  %692 = vmatmul.msk.bf16.gmra.mxu3 %vm307_vm0, %v710_v13 }
  0x43   : > { %681 = vmatmul.msk.bf16.gmra.mxu0 %vm307_vm0, %v699_v14  ;;  %685 = vmatmul.msk.bf16.gmra.mxu1 %vm307_vm0, %v703_v15 }
  0x44   : > { %689 = vmatmul.msk.bf16.gmra.mxu2 %vm307_vm0, %v707_v16  ;;  %693 = vmatmul.msk.bf16.gmra.mxu3 %vm307_vm0, %v711_v17 }
  0x90   : > { %v365_v18 = vpop.f32.mrf.mxu0  ;;  %v385_v19 = vpop.f32.mrf.mxu1 }
  0x91   : > { %v366_v21 = vadd.f32 %v911_v20, %v365_v18  ;;  %v386_v22 = vadd.f32 %v911_v20, %v385_v19 }
  0x93   : > { %v445_v29 = vmax.f32 %v366_v21, 0.0  ;;  %v453_v30 = vmax.f32 %v386_v22, 0.0 }
  0x97   : > { %v405_v23 = vpop.f32.mrf.mxu2  ;;  %v425_v24 = vpop.f32.mrf.mxu3 }
  0x98   : > { %v367_v25 = vpop.f32.mrf.mxu0  ;;  %v387_v26 = vpop.f32.mrf.mxu1  ;;  %v406_v35 = vadd.f32 %v911_v20, %v405_v23  ;;  %v426_v36 = vadd.f32 %v911_v20, %v425_v24 }
  0x99   : > { %v368_v27 = vadd.f32 %v911_v20, %v367_v25  ;;  %v388_v28 = vadd.f32 %v911_v20, %v387_v26 }
  0x9a   : > { %v461_v43 = vmax.f32 %v406_v35, 0.0  ;;  %v469_v44 = vmax.f32 %v426_v36, 0.0 }
  0x9b   : > { %v446_v31 = vmax.f32 %v368_v27, 0.0  ;;  %v454_v32 = vmax.f32 %v388_v28, 0.0 }
  0x9d   : > { %v717_v33 = vpack.c.bf16 %v446_v31, %v445_v29  ;;  %v737_v34 = vpack.c.bf16 %v454_v32, %v453_v30 }
  0x9f   : > { %718 = vst [vmem:[%s922_s27] sm:$0xff] %v717_v33   ;;  %v407_v37 = vpop.f32.mrf.mxu2  ;;  %v427_v38 = vpop.f32.mrf.mxu3 }
  0xa0   : > { %797 = vst [vmem:[%s922_s27 + $0x20] sm:$0xff] %v737_v34   ;;  %v408_v39 = vadd.f32 %v911_v20, %v407_v37  ;;  %v428_v40 = vadd.f32 %v911_v20, %v427_v38  ;;  %v370_v41 = vpop.f32.mrf.mxu0  ;;  %v390_v42 = vpop.f32.mrf.mxu1 }
  0xa1   : > { %v371_v49 = vadd.f32 %v911_v20, %v370_v41  ;;  %v391_v50 = vadd.f32 %v911_v20, %v390_v42 }
  0xa2   : > { %v462_v45 = vmax.f32 %v408_v39, 0.0  ;;  %v470_v46 = vmax.f32 %v428_v40, 0.0 }
  0xa3   : > { %v447_v57 = vmax.f32 %v371_v49, 0.0  ;;  %v455_v58 = vmax.f32 %v391_v50, 0.0 }
  0xa4   : > { %v757_v47 = vpack.c.bf16 %v462_v45, %v461_v43  ;;  %v777_v48 = vpack.c.bf16 %v470_v46, %v469_v44 }
  0xa6   : > { %801 = vst [vmem:[%s922_s27 + $0x40] sm:$0xff] %v757_v47  }
  0xa7   : > { %805 = vst [vmem:[%s922_s27 + $0x60] sm:$0xff] %v777_v48   ;;  %v410_v51 = vpop.f32.mrf.mxu2  ;;  %v430_v52 = vpop.f32.mrf.mxu3 }
  0xa8   : > { %v372_v53 = vpop.f32.mrf.mxu0  ;;  %v392_v54 = vpop.f32.mrf.mxu1  ;;  %v411_v63 = vadd.f32 %v911_v20, %v410_v51  ;;  %v431_v0 = vadd.f32 %v911_v20, %v430_v52 }
  0xa9   : > { %v373_v55 = vadd.f32 %v911_v20, %v372_v53  ;;  %v393_v56 = vadd.f32 %v911_v20, %v392_v54 }
  0xaa   : > { %v463_v7 = vmax.f32 %v411_v63, 0.0  ;;  %v471_v8 = vmax.f32 %v431_v0, 0.0 }
  0xab   : > { %v448_v59 = vmax.f32 %v373_v55, 0.0  ;;  %v456_v60 = vmax.f32 %v393_v56, 0.0 }
  0xad   : > { %v722_v61 = vpack.c.bf16 %v448_v59, %v447_v57  ;;  %v742_v62 = vpack.c.bf16 %v456_v60, %v455_v58 }
  0xaf   : > { %794 = vst [vmem:[%s922_s27 + $0x8] sm:$0xff] %v722_v61   ;;  %v412_v1 = vpop.f32.mrf.mxu2  ;;  %v432_v2 = vpop.f32.mrf.mxu3 }
  0xb0   : > { %798 = vst [vmem:[%s922_s27 + $0x28] sm:$0xff] %v742_v62   ;;  %v413_v3 = vadd.f32 %v911_v20, %v412_v1  ;;  %v433_v4 = vadd.f32 %v911_v20, %v432_v2  ;;  %v375_v5 = vpop.f32.mrf.mxu0  ;;  %v395_v6 = vpop.f32.mrf.mxu1 }
  0xb1   : > { %v376_v13 = vadd.f32 %v911_v20, %v375_v5  ;;  %v396_v14 = vadd.f32 %v911_v20, %v395_v6 }
  0xb2   : > { %v464_v9 = vmax.f32 %v413_v3, 0.0  ;;  %v472_v10 = vmax.f32 %v433_v4, 0.0 }
  0xb3   : > { %v449_v22 = vmax.f32 %v376_v13, 0.0  ;;  %v457_v23 = vmax.f32 %v396_v14, 0.0 }
  0xb4   : > { %v762_v11 = vpack.c.bf16 %v464_v9, %v463_v7  ;;  %v782_v12 = vpack.c.bf16 %v472_v10, %v471_v8 }
  0xb6   : > { %802 = vst [vmem:[%s922_s27 + $0x48] sm:$0xff] %v762_v11  }
  0xb7   : > { %806 = vst [vmem:[%s922_s27 + $0x68] sm:$0xff] %v782_v12   ;;  %v415_v15 = vpop.f32.mrf.mxu2  ;;  %v435_v16 = vpop.f32.mrf.mxu3 }
  0xb8   : > { %v377_v17 = vpop.f32.mrf.mxu0  ;;  %v397_v18 = vpop.f32.mrf.mxu1  ;;  %v416_v28 = vadd.f32 %v911_v20, %v415_v15  ;;  %v436_v29 = vadd.f32 %v911_v20, %v435_v16 }
  0xb9   : > { %v378_v19 = vadd.f32 %v911_v20, %v377_v17  ;;  %v398_v21 = vadd.f32 %v911_v20, %v397_v18 }
  0xba   : > { %v465_v36 = vmax.f32 %v416_v28, 0.0  ;;  %v473_v37 = vmax.f32 %v436_v29, 0.0 }
  0xbb   : > { %v450_v24 = vmax.f32 %v378_v19, 0.0  ;;  %v458_v25 = vmax.f32 %v398_v21, 0.0 }
  0xbd   : > { %v727_v26 = vpack.c.bf16 %v450_v24, %v449_v22  ;;  %v747_v27 = vpack.c.bf16 %v458_v25, %v457_v23 }
  0xbf   : > { %795 = vst [vmem:[%s922_s27 + $0x10] sm:$0xff] %v727_v26   ;;  %v417_v30 = vpop.f32.mrf.mxu2  ;;  %v437_v31 = vpop.f32.mrf.mxu3 }
  0xc0   : > { %799 = vst [vmem:[%s922_s27 + $0x30] sm:$0xff] %v747_v27   ;;  %v418_v32 = vadd.f32 %v911_v20, %v417_v30  ;;  %v438_v33 = vadd.f32 %v911_v20, %v437_v31  ;;  %v380_v34 = vpop.f32.mrf.mxu0  ;;  %v400_v35 = vpop.f32.mrf.mxu1 }
  0xc1   : > { %v381_v42 = vadd.f32 %v911_v20, %v380_v34  ;;  %v401_v43 = vadd.f32 %v911_v20, %v400_v35 }
  0xc2   : > { %v466_v38 = vmax.f32 %v418_v32, 0.0  ;;  %v474_v39 = vmax.f32 %v438_v33, 0.0 }
  0xc3   : > { %v451_v50 = vmax.f32 %v381_v42, 0.0  ;;  %v459_v51 = vmax.f32 %v401_v43, 0.0 }
  0xc4   : > { %v767_v40 = vpack.c.bf16 %v466_v38, %v465_v36  ;;  %v787_v41 = vpack.c.bf16 %v474_v39, %v473_v37 }
  0xc6   : > { %803 = vst [vmem:[%s922_s27 + $0x50] sm:$0xff] %v767_v40  }
  0xc7   : > { %807 = vst [vmem:[%s922_s27 + $0x70] sm:$0xff] %v787_v41   ;;  %v420_v44 = vpop.f32.mrf.mxu2  ;;  %v440_v45 = vpop.f32.mrf.mxu3 }
  0xc8   : > { %v382_v46 = vpop.f32.mrf.mxu0  ;;  %v402_v47 = vpop.f32.mrf.mxu1  ;;  %v421_v56 = vadd.f32 %v911_v20, %v420_v44  ;;  %v441_v57 = vadd.f32 %v911_v20, %v440_v45 }
  0xc9   : > { %v383_v48 = vadd.f32 %v911_v20, %v382_v46  ;;  %v403_v49 = vadd.f32 %v911_v20, %v402_v47 }
  0xca   : > { %v467_v62 = vmax.f32 %v421_v56, 0.0  ;;  %v475_v63 = vmax.f32 %v441_v57, 0.0 }
  0xcb   : > { %v452_v52 = vmax.f32 %v383_v48, 0.0  ;;  %v460_v53 = vmax.f32 %v403_v49, 0.0 }
  0xcd   : > { %v732_v54 = vpack.c.bf16 %v452_v52, %v451_v50  ;;  %v752_v55 = vpack.c.bf16 %v460_v53, %v459_v51 }
  0xcf   : > { %796 = vst [vmem:[%s922_s27 + $0x18] sm:$0xff] %v732_v54   ;;  %v422_v58 = vpop.f32.mrf.mxu2  ;;  %v442_v59 = vpop.f32.mrf.mxu3 }
  0xd0   : > { %800 = vst [vmem:[%s922_s27 + $0x38] sm:$0xff] %v752_v55   ;;  %v423_v60 = vadd.f32 %v911_v20, %v422_v58  ;;  %v443_v61 = vadd.f32 %v911_v20, %v442_v59 }
  0xd2   : > { %v468_v0 = vmax.f32 %v423_v60, 0.0  ;;  %v476_v1 = vmax.f32 %v443_v61, 0.0 }
  0xd4   : > { %v772_v2 = vpack.c.bf16 %v468_v0, %v467_v62  ;;  %v792_v3 = vpack.c.bf16 %v476_v1, %v475_v63 }
  0xd6   : > { %804 = vst [vmem:[%s922_s27 + $0x58] sm:$0xff] %v772_v2  }
  0xd7   : > { %808 = vst [vmem:[%s922_s27 + $0x78] sm:$0xff] %v792_v3  }
  0xd8 PF: > { %s13_s12 = sadd.s32 1, %s830_s12  }
  0xd9   : > { %p10_p4 = scmp.ge.s32.totalorder %s13_s12, 4  }
  0xdb   :  { %12 = sbr.rel (!%p10_p4) target bundleno = 1 (0x1), region = 62 }

// kernel: alpha_yolonas_forward.9
= control target key start
LH: loop header
LB: loop body
LE: loop exit
PB: predicated region body
PF: predicated region fallthrough
CT: control target
= control target key end

     0   :  { %s620_s12 = smov 0   ;;  %s699_s0 = inlined_call_operand.vmem [shape: bf16[128,144], index: 0, kind: input, shape index: {}]   ;;  %s700_s1 = inlined_call_operand.vmem [shape: bf16[144,128], index: 1, kind: input, shape index: {}]   ;;  %s701_s2 = inlined_call_operand.vmem [shape: f32[1,128], index: 2, kind: input, shape index: {}]   ;;  %s702_s3 = inlined_call_operand.vmem [shape: bf16[128,128], index: 3, kind: output, shape index: {}]  }
   0x1 LB: > { %s449_s13 = sadd.s32 4294967295, %s598_s12   ;;  %p453_p0 = scmp.ge.s32.totalorder %s598_s12, 1  ;;  %s598_s12 = sphi %s620_s12, %s13_s12  }
   0x2   : > { %p139_p1 = scmp.lt.s32.totalorder %s598_s12, 3 }
   0x4   : > { %p140_p2 = pnand %p453_p0, %p139_p1 }
   0x5   : > { %s454_s18 = sshll.u32 (!%p140_p2), %s449_s13, 3 }
   0x6   : > { %143 = sbr.rel (%p140_p2) target bundleno = 208 (0xd0), region = 32  ;;  %p165_p3 = scmp.lt.s32.totalorder (!%p140_p2), %s454_s18, 15 }
   0xb   : > { %v549_v0 = vld [vmem:[%s700_s1 + $0x38] sm:$0xff]  ;;  %v550_v1 = vld [vmem:[%s700_s1 + $0x40] sm:$0xff]  ;;  %v548_v2 = vld [vmem:[%s700_s1 + $0x30] sm:$0xff]  ;;  %s704_s18 = smov (!%p165_p3, %s454_s18), 15  ;;  %vm298_vm0 = vcmask 130048  }
   0xc   : > { %311 = vmatpush.bf16.msra.mxu0 %v549_v0  ;;  %574 = vmatpush.bf16.msra.mxu2 %v549_v0  ;;  %s533_s21 = sshll.u32 %s704_s18, 3  ;;  %v547_v3 = vld [vmem:[%s700_s1 + $0x28] sm:$0xff]  ;;  %v546_v8 = vld [vmem:[%s700_s1 + $0x20] sm:$0xff]  ;;  %v545_v11 = vld [vmem:[%s700_s1 + $0x18] sm:$0xff]  ;;  %s458_s13 = sshll.u32 %s704_s18, 2 }
   0xd   : > { %582 = vmatpush.bf16.msra.mxu3 %v550_v1  ;;  %347 = vmatpush.bf16.msra.mxu1 %v550_v1  ;;  %s646_s26 = scalar_lea.vmem %s699_s0, %s533_s21  ;;  %v544_v12 = vld [vmem:[%s700_s1 + $0x10] sm:$0xff]  ;;  %v543_v15 = vld [vmem:[%s700_s1 + $0x8] sm:$0xff]  ;;  %v542_v17 = vld [vmem:[%s700_s1] sm:$0xff]  ;;  %s690_s16 = scalar_lea.vmem %s702_s3, %s458_s13 }
   0xe   : > { %v536_v4 = vld [vmem:[%s646_s26 + $0x14] sm:$0xf]  ;;  %v471_v5 = vld [vmem:[%s646_s26 + $0x18] sm:$0xf0]  ;;  %v534_v7 = vld [vmem:[%s646_s26 + $0x4] sm:$0xf] }
   0xf   : > { %v474_v6 = vor.u32 %v536_v4, %v471_v5  ;;  %v463_v9 = vld [vmem:[%s646_s26 + $0x8] sm:$0xf0]  ;;  %v538_v13 = vld [vmem:[%s646_s26 + $0x24] sm:$0xf]  ;;  %v461_v18 = vld [vmem:[%s646_s26] sm:$0xf] }
  0x10   : > { %312 = vmatpush.bf16.msra.mxu0 %v548_v2  ;;  %575 = vmatpush.bf16.msra.mxu2 %v548_v2  ;;  %v466_v10 = vor.u32 %v534_v7, %v463_v9  ;;  %v479_v14 = vld [vmem:[%s646_s26 + $0x28] sm:$0xf0]  ;;  %v535_v19 = vld [vmem:[%s646_s26 + $0x4] sm:$0xf0]  ;;  %v477_v20 = vld [vmem:[%s646_s26 + $0x20] sm:$0xf] }
  0x11   : > { %528 = vmatmul.msk.bf16.vlgmr.msra.gmra.mxu3 %vm298_vm0, %v474_v6  ;;  %v482_v16 = vor.u32 %v538_v13, %v479_v14  ;;  %v539_v21 = vld [vmem:[%s646_s26 + $0x24] sm:$0xf0]  ;;  %v462_v22 = vor.u32 %v535_v19, %v461_v18  ;;  %v540_v24 = vld [vmem:[%s646_s26 + $0x34] sm:$0xf]  ;;  %v487_v25 = vld [vmem:[%s646_s26 + $0x38] sm:$0xf0] }
  0x12   : > { %527 = vmatmul.msk.bf16.vlgmr.msra.gmra.mxu1 %vm298_vm0, %v466_v10  ;;  %v478_v23 = vor.u32 %v539_v21, %v477_v20  ;;  %v490_v26 = vor.u32 %v540_v24, %v487_v25  ;;  %v469_v27 = vld [vmem:[%s646_s26 + $0x10] sm:$0xf]  ;;  %v537_v28 = vld [vmem:[%s646_s26 + $0x14] sm:$0xf0]  ;;  %v591_v37 = vld [vmem:[%s701_s2] ss:$0 sm:$0xff] }
  0x13   : > { %v485_v29 = vld [vmem:[%s646_s26 + $0x30] sm:$0xf]  ;;  %v541_v30 = vld [vmem:[%s646_s26 + $0x34] sm:$0xf0]  ;;  %v470_v31 = vor.u32 %v537_v28, %v469_v27 }
  0x14   : > { %313 = vmatpush.bf16.msra.mxu0 %v547_v3  ;;  %576 = vmatpush.bf16.msra.mxu2 %v547_v3  ;;  %v486_v32 = vor.u32 %v541_v30, %v485_v29 }
  0x18   : > { %314 = vmatpush.bf16.msra.mxu0 %v546_v8  ;;  %577 = vmatpush.bf16.msra.mxu2 %v546_v8 }
  0x1c   : > { %315 = vmatpush.bf16.msra.mxu0 %v545_v11  ;;  %578 = vmatpush.bf16.msra.mxu2 %v545_v11 }
  0x20   : > { %316 = vmatpush.bf16.msra.mxu0 %v544_v12  ;;  %579 = vmatpush.bf16.msra.mxu2 %v544_v12 }
  0x21   : > { %529 = vmatmul.msk.bf16.gmra.mxu3 %vm298_vm0, %v482_v16 }
  0x24   : > { %317 = vmatpush.bf16.msra.mxu0 %v543_v15  ;;  %580 = vmatpush.bf16.msra.mxu2 %v543_v15 }
  0x28   : > { %318 = vmatpush.bf16.msra.mxu0 %v542_v17  ;;  %581 = vmatpush.bf16.msra.mxu2 %v542_v17 }
  0x2b   : > { %319 = vmatmul.bf16.vlgmr.msra.gmra.mxu0 %v462_v22  ;;  %329 = vmatmul.bf16.vlgmr.msra.gmra.mxu2 %v478_v23 }
  0x31   : > { %530 = vmatmul.msk.bf16.gmra.mxu3 %vm298_vm0, %v490_v26 }
  0x3b   : > { %324 = vmatmul.bf16.gmra.mxu0 %v470_v31  ;;  %334 = vmatmul.bf16.gmra.mxu2 %v486_v32 }
  0x8f   : > { %v349_v35 = vpop.f32.mrf.mxu1 }
  0x94   : > { %v354_v33 = vpop.f32.mrf.mxu3 }
  0x97   : > { %v351_v42 = vpop.f32.mrf.mxu1 }
  0x9c   : > { %v356_v34 = vpop.f32.mrf.mxu3 }
  0xa4   : > { %v359_v38 = vpop.f32.mrf.mxu3 }
  0xa8   : > { %v320_v36 = vpop.f32.mrf.mxu0 }
  0xa9   : > { %v321_v39 = vadd.f32 %v591_v37, %v320_v36 }
  0xab   : > { %v350_v43 = vadd.f32 %v349_v35, %v321_v39 }
  0xac   : > { %v361_v47 = vpop.f32.mrf.mxu3 }
  0xad   : > { %v369_v48 = vmax.f32 %v350_v43, 0.0 }
  0xae   : > { %v330_v40 = vpop.f32.mrf.mxu2 }
  0xaf   : > { %v331_v45 = vadd.f32 %v591_v37, %v330_v40 }
  0xb0   : > { %v322_v41 = vpop.f32.mrf.mxu0 }
  0xb1   : > { %v323_v44 = vadd.f32 %v591_v37, %v322_v41  ;;  %v360_v51 = vadd.f32 %v359_v38, %v331_v45 }
  0xb3   : > { %v352_v46 = vadd.f32 %v351_v42, %v323_v44  ;;  %v373_v56 = vmax.f32 %v360_v51, 0.0 }
  0xb4   : > { %v364_v60 = vpop.f32.mrf.mxu3 }
  0xb5   : > { %v370_v49 = vmax.f32 %v352_v46, 0.0 }
  0xb6   : > { %v332_v50 = vpop.f32.mrf.mxu2 }
  0xb7   : > { %v554_v52 = vpack.c.bf16 %v370_v49, %v369_v48  ;;  %v333_v53 = vadd.f32 %v591_v37, %v332_v50 }
  0xb8   : > { %v325_v54 = vpop.f32.mrf.mxu0 }
  0xb9   : > { %555 = vst [vmem:[%s690_s16] sm:$0xff] %v554_v52   ;;  %v362_v55 = vadd.f32 %v361_v47, %v333_v53  ;;  %v326_v59 = vadd.f32 %v591_v37, %v325_v54 }
  0xbb   : > { %v374_v57 = vmax.f32 %v362_v55, 0.0  ;;  %v355_v63 = vadd.f32 %v354_v33, %v326_v59 }
  0xbc   : > { %v366_v9 = vpop.f32.mrf.mxu3 }
  0xbd   : > { %v564_v58 = vpack.c.bf16 %v374_v57, %v373_v56  ;;  %v371_v3 = vmax.f32 %v355_v63, 0.0 }
  0xbe   : > { %v335_v61 = vpop.f32.mrf.mxu2 }
  0xbf   : > { %572 = vst [vmem:[%s690_s16 + $0x10] sm:$0xff] %v564_v58   ;;  %v336_v1 = vadd.f32 %v591_v37, %v335_v61 }
  0xc0   : > { %v327_v62 = vpop.f32.mrf.mxu0 }
  0xc1   : > { %v328_v0 = vadd.f32 %v591_v37, %v327_v62  ;;  %v365_v6 = vadd.f32 %v364_v60, %v336_v1 }
  0xc3   : > { %v357_v2 = vadd.f32 %v356_v34, %v328_v0  ;;  %v375_v11 = vmax.f32 %v365_v6, 0.0 }
  0xc5   : > { %v372_v4 = vmax.f32 %v357_v2, 0.0 }
  0xc6   : > { %v337_v5 = vpop.f32.mrf.mxu2 }
  0xc7   : > { %v559_v7 = vpack.c.bf16 %v372_v4, %v371_v3  ;;  %v338_v8 = vadd.f32 %v591_v37, %v337_v5 }
  0xc9   : > { %571 = vst [vmem:[%s690_s16 + $0x8] sm:$0xff] %v559_v7   ;;  %v367_v10 = vadd.f32 %v366_v9, %v338_v8 }
  0xcb   : > { %v376_v12 = vmax.f32 %v367_v10, 0.0 }
  0xcd   : > { %v569_v13 = vpack.c.bf16 %v376_v12, %v375_v11 }
  0xcf   : > { %573 = vst [vmem:[%s690_s16 + $0x18] sm:$0xff] %v569_v13  }
  0xd0 PF: > { %s13_s12 = sadd.s32 1, %s598_s12  }
  0xd1   : > { %p10_p4 = scmp.ge.s32.totalorder %s13_s12, 4  }
  0xd3   :  { %12 = sbr.rel (!%p10_p4) target bundleno = 1 (0x1), region = 62 }

// kernel: alpha_yolonas_forward.10
= control target key start
LH: loop header
LB: loop body
LE: loop exit
PB: predicated region body
PF: predicated region fallthrough
CT: control target
= control target key end

     0   :  { %s613_s12 = smov 0   ;;  %s691_s0 = inlined_call_operand.vmem [shape: bf16[32,288], index: 0, kind: input, shape index: {}]   ;;  %s692_s1 = inlined_call_operand.vmem [shape: bf16[288,128], index: 1, kind: input, shape index: {}]   ;;  %s693_s2 = inlined_call_operand.vmem [shape: f32[1,128], index: 2, kind: input, shape index: {}]   ;;  %s694_s3 = inlined_call_operand.vmem [shape: bf16[32,128], index: 3, kind: output, shape index: {}]  }
   0x1 LB: > { %s453_s13 = sadd.s32 4294967295, %s591_s12   ;;  %p457_p0 = scmp.ge.s32.totalorder %s591_s12, 1  ;;  %s591_s12 = sphi %s613_s12, %s13_s12  }
   0x2   : > { %p139_p1 = scmp.lt.s32.totalorder %s591_s12, 3 }
   0x4   : > { %p140_p2 = pnand %p457_p0, %p139_p1 }
   0x5   : > { %s458_s18 = sshll.u32 (!%p140_p2), %s453_s13, 1 }
   0x6   : > { %143 = sbr.rel (%p140_p2) target bundleno = 188 (0xbc), region = 32  ;;  %p165_p3 = scmp.lt.s32.totalorder (!%p140_p2), %s458_s18, 3 }
   0xb   : > { %v559_v0 = vld [vmem:[%s692_s1 + $0x38] sm:$0xff]  ;;  %v558_v2 = vld [vmem:[%s692_s1 + $0x30] sm:$0xff]  ;;  %v569_v4 = vld [vmem:[%s692_s1 + $0x88] sm:$0xff]  ;;  %s696_s18 = smov (!%p165_p3, %s458_s18), 3  ;;  %vm345_vm0 = vcmask 261120  }
   0xc   : > { %v567_v1 = vld [vmem:[%s692_s1 + $0x78] sm:$0xff]  ;;  %349 = vmatpush.bf16.msra.mxu0 %v559_v0  ;;  %v566_v3 = vld [vmem:[%s692_s1 + $0x70] sm:$0xff]  ;;  %383 = vmatpush.bf16.msra.mxu2 %v569_v4  ;;  %v568_v5 = vld [vmem:[%s692_s1 + $0x80] sm:$0xff]  ;;  %s575_s27 = smul.u32 12, %s696_s18  ;;  %s461_s5 = sshll.u32 %s696_s18, 2 }
   0xd   : > { %363 = vmatpush.bf16.msra.mxu1 %v567_v1  ;;  %v557_v6 = vld [vmem:[%s692_s1 + $0x28] sm:$0xff]  ;;  %v556_v11 = vld [vmem:[%s692_s1 + $0x20] sm:$0xff]  ;;  %v555_v13 = vld [vmem:[%s692_s1 + $0x18] sm:$0xff]  ;;  %s175_s8 = scalar_lea.vmem %s694_s3, %s461_s5 }
   0xe   : > { %v565_v7 = vld [vmem:[%s692_s1 + $0x68] sm:$0xff]  ;;  %s169_s7 = scalar_lea.vmem %s691_s0, %s575_s27  ;;  %v564_v12 = vld [vmem:[%s692_s1 + $0x60] sm:$0xff]  ;;  %v563_v14 = vld [vmem:[%s692_s1 + $0x58] sm:$0xff] }
   0xf   : > { %v472_v8 = vld [vmem:[%s169_s7 + $0x8] sm:$0xf]  ;;  %v551_v9 = vld [vmem:[%s169_s7 + $0x10] sm:$0xf0]  ;;  %v552_v19 = vld [vmem:[%s692_s1] sm:$0xff] }
  0x10   : > { %350 = vmatpush.bf16.msra.mxu0 %v558_v2  ;;  %384 = vmatpush.bf16.msra.mxu2 %v568_v5  ;;  %v473_v10 = vor.u32 %v551_v9, %v472_v8  ;;  %v554_v15 = vld [vmem:[%s692_s1 + $0x10] sm:$0xff]  ;;  %v553_v17 = vld [vmem:[%s692_s1 + $0x8] sm:$0xff]  ;;  %v560_v20 = vld [vmem:[%s692_s1 + $0x40] sm:$0xff] }
  0x11   : > { %364 = vmatpush.bf16.msra.mxu1 %v566_v3  ;;  %v562_v16 = vld [vmem:[%s692_s1 + $0x50] sm:$0xff]  ;;  %v561_v18 = vld [vmem:[%s692_s1 + $0x48] sm:$0xff]  ;;  %v464_v21 = vld [vmem:[%s169_s7] sm:$0xf] }
  0x12   : > { %v550_v22 = vld [vmem:[%s169_s7 + $0x8] sm:$0xf0]  ;;  %v549_v23 = vld [vmem:[%s169_s7 + $0x4] sm:$0xf]  ;;  %v466_v24 = vld [vmem:[%s169_s7 + $0xc] sm:$0xf0] }
  0x13   : > { %546 = vmatmul.msk.bf16.vlgmr.msra.gmra.mxu2 %vm345_vm0, %v473_v10  ;;  %v465_v25 = vor.u32 %v550_v22, %v464_v21  ;;  %v469_v26 = vor.u32 %v549_v23, %v466_v24  ;;  %v584_v27 = vld [vmem:[%s693_s2] ss:$0 sm:$0xff] }
  0x14   : > { %351 = vmatpush.bf16.msra.mxu0 %v557_v6 }
  0x15   : > { %365 = vmatpush.bf16.msra.mxu1 %v565_v7 }
  0x18   : > { %352 = vmatpush.bf16.msra.mxu0 %v556_v11 }
  0x19   : > { %366 = vmatpush.bf16.msra.mxu1 %v564_v12 }
  0x1c   : > { %353 = vmatpush.bf16.msra.mxu0 %v555_v13 }
  0x1d   : > { %367 = vmatpush.bf16.msra.mxu1 %v563_v14 }
  0x20   : > { %354 = vmatpush.bf16.msra.mxu0 %v554_v15 }
  0x21   : > { %368 = vmatpush.bf16.msra.mxu1 %v562_v16 }
  0x24   : > { %355 = vmatpush.bf16.msra.mxu0 %v553_v17 }
  0x25   : > { %369 = vmatpush.bf16.msra.mxu1 %v561_v18 }
  0x28   : > { %356 = vmatpush.bf16.msra.mxu0 %v552_v19 }
  0x29   : > { %370 = vmatpush.bf16.msra.mxu1 %v560_v20 }
  0x2b   : > { %357 = vmatmul.bf16.vlgmr.msra.gmra.mxu0 %v465_v25 }
  0x2c   : > { %371 = vmatmul.bf16.vlgmr.msra.gmra.mxu1 %v469_v26 }
  0x96   : > { %v386_v30 = vpop.f32.mrf.mxu2 }
  0x9e   : > { %v388_v38 = vpop.f32.mrf.mxu2 }
  0xa8   : > { %v358_v28 = vpop.f32.mrf.mxu0 }
  0xa9   : > { %v372_v29 = vpop.f32.mrf.mxu1  ;;  %v359_v31 = vadd.f32 %v584_v27, %v358_v28 }
  0xab   : > { %v373_v32 = vadd.f32 %v372_v29, %v359_v31 }
  0xad   : > { %v387_v36 = vadd.f32 %v386_v30, %v373_v32 }
  0xaf   : > { %v391_v40 = vmax.f32 %v387_v36, 0.0 }
  0xb0   : > { %v360_v33 = vpop.f32.mrf.mxu0 }
  0xb1   : > { %v361_v34 = vadd.f32 %v584_v27, %v360_v33  ;;  %v374_v35 = vpop.f32.mrf.mxu1 }
  0xb3   : > { %v375_v37 = vadd.f32 %v374_v35, %v361_v34 }
  0xb5   : > { %v389_v39 = vadd.f32 %v388_v38, %v375_v37 }
  0xb7   : > { %v392_v41 = vmax.f32 %v389_v39, 0.0 }
  0xb9   : > { %v573_v42 = vpack.c.bf16 %v392_v41, %v391_v40 }
  0xbb   : > { %574 = vst [vmem:[%s175_s8] sm:$0xff] %v573_v42  }
  0xbc PF: > { %s13_s12 = sadd.s32 1, %s591_s12  }
  0xbd   : > { %p10_p4 = scmp.ge.s32.totalorder %s13_s12, 4  }
  0xbf   :  { %12 = sbr.rel (!%p10_p4) target bundleno = 1 (0x1), region = 62 }

// kernel: alpha_yolonas_forward.12
= control target key start
LH: loop header
LB: loop body
LE: loop exit
PB: predicated region body
PF: predicated region fallthrough
CT: control target
= control target key end

     0   :  { %vm338_vm0 = vcmask 523264   ;;  %s798_s1 = inlined_call_operand.vmem [shape: bf16[576,128], index: 1, kind: input, shape index: {}]   ;;  %s799_s2 = inlined_call_operand.vmem [shape: f32[1,128], index: 2, kind: input, shape index: {}]   ;;  %s800_s0 = inlined_call_operand.vmem [shape: bf16[16,576], index: 0, kind: input, shape index: {}]   ;;  %s801_s3 = inlined_call_operand.vmem [shape: bf16[16,128], index: 3, kind: output, shape index: {}]  }
   0x1   :  { %v599_v0 = vld [vmem:[%s798_s1 + $0x38] sm:$0xff]  ;;  %v598_v4 = vld [vmem:[%s798_s1 + $0x30] sm:$0xff]  ;;  %v597_v8 = vld [vmem:[%s798_s1 + $0x28] sm:$0xff] }
   0x2   :  { %v615_v1 = vld [vmem:[%s798_s1 + $0xb8] sm:$0xff]  ;;  %342 = vmatpush.bf16.msra.mxu0 %v599_v0  ;;  %v614_v5 = vld [vmem:[%s798_s1 + $0xb0] sm:$0xff]  ;;  %v613_v9 = vld [vmem:[%s798_s1 + $0xa8] sm:$0xff] }
   0x3   :  { %v623_v2 = vld [vmem:[%s798_s1 + $0xf8] sm:$0xff]  ;;  %370 = vmatpush.bf16.msra.mxu2 %v615_v1  ;;  %v622_v6 = vld [vmem:[%s798_s1 + $0xf0] sm:$0xff]  ;;  %v621_v10 = vld [vmem:[%s798_s1 + $0xe8] sm:$0xff] }
   0x4   :  { %v607_v3 = vld [vmem:[%s798_s1 + $0x78] sm:$0xff]  ;;  %384 = vmatpush.bf16.msra.mxu3 %v623_v2  ;;  %v606_v7 = vld [vmem:[%s798_s1 + $0x70] sm:$0xff]  ;;  %v605_v11 = vld [vmem:[%s798_s1 + $0x68] sm:$0xff] }
   0x5   :  { %356 = vmatpush.bf16.msra.mxu1 %v607_v3  ;;  %v596_v12 = vld [vmem:[%s798_s1 + $0x20] sm:$0xff]  ;;  %v595_v16 = vld [vmem:[%s798_s1 + $0x18] sm:$0xff]  ;;  %v594_v20 = vld [vmem:[%s798_s1 + $0x10] sm:$0xff] }
   0x6   :  { %343 = vmatpush.bf16.msra.mxu0 %v598_v4  ;;  %v612_v13 = vld [vmem:[%s798_s1 + $0xa0] sm:$0xff]  ;;  %v611_v17 = vld [vmem:[%s798_s1 + $0x98] sm:$0xff]  ;;  %v610_v21 = vld [vmem:[%s798_s1 + $0x90] sm:$0xff] }
   0x7   :  { %371 = vmatpush.bf16.msra.mxu2 %v614_v5  ;;  %v620_v14 = vld [vmem:[%s798_s1 + $0xe0] sm:$0xff]  ;;  %v619_v18 = vld [vmem:[%s798_s1 + $0xd8] sm:$0xff]  ;;  %v618_v22 = vld [vmem:[%s798_s1 + $0xd0] sm:$0xff] }
   0x8   :  { %385 = vmatpush.bf16.msra.mxu3 %v622_v6  ;;  %v604_v15 = vld [vmem:[%s798_s1 + $0x60] sm:$0xff]  ;;  %v603_v19 = vld [vmem:[%s798_s1 + $0x58] sm:$0xff]  ;;  %v602_v23 = vld [vmem:[%s798_s1 + $0x50] sm:$0xff] }
   0x9   :  { %357 = vmatpush.bf16.msra.mxu1 %v606_v7  ;;  %v593_v24 = vld [vmem:[%s798_s1 + $0x8] sm:$0xff]  ;;  %v592_v28 = vld [vmem:[%s798_s1] sm:$0xff]  ;;  %v589_v33 = vld [vmem:[%s800_s0 + $0x10] sm:$0xf0] }
   0xa   :  { %344 = vmatpush.bf16.msra.mxu0 %v597_v8  ;;  %v609_v25 = vld [vmem:[%s798_s1 + $0x88] sm:$0xff]  ;;  %v608_v29 = vld [vmem:[%s798_s1 + $0x80] sm:$0xff]  ;;  %v590_v35 = vld [vmem:[%s800_s0 + $0x18] sm:$0xf0] }
   0xb   :  { %372 = vmatpush.bf16.msra.mxu2 %v613_v9  ;;  %v617_v26 = vld [vmem:[%s798_s1 + $0xc8] sm:$0xff]  ;;  %v616_v30 = vld [vmem:[%s798_s1 + $0xc0] sm:$0xff]  ;;  %v426_v39 = vld [vmem:[%s800_s0 + $0x14] sm:$0xf0] }
   0xc   :  { %386 = vmatpush.bf16.msra.mxu3 %v621_v10  ;;  %v601_v27 = vld [vmem:[%s798_s1 + $0x48] sm:$0xff]  ;;  %v600_v31 = vld [vmem:[%s798_s1 + $0x40] sm:$0xff]  ;;  %v627_v40 = vld [vmem:[%s798_s1 + $0x118] sm:$0xff] }
   0xd   :  { %358 = vmatpush.bf16.msra.mxu1 %v605_v11  ;;  %v424_v32 = vld [vmem:[%s800_s0] sm:$0xf]  ;;  %v432_v34 = vld [vmem:[%s800_s0 + $0x8] sm:$0xf]  ;;  %v588_v36 = vld [vmem:[%s800_s0 + $0xc] sm:$0xf] }
   0xe   :  { %345 = vmatpush.bf16.msra.mxu0 %v596_v12  ;;  %v434_v37 = vld [vmem:[%s800_s0 + $0x1c] sm:$0xf0]  ;;  %v587_v38 = vld [vmem:[%s800_s0 + $0x4] sm:$0xf]  ;;  %v425_v41 = vor.u32 %v589_v33, %v424_v32  ;;  %v433_v42 = vor.u32 %v590_v35, %v432_v34  ;;  %v626_v45 = vld [vmem:[%s798_s1 + $0x110] sm:$0xff] }
   0xf   :  { %373 = vmatpush.bf16.msra.mxu2 %v612_v13  ;;  %v437_v43 = vor.u32 %v588_v36, %v434_v37  ;;  %v429_v44 = vor.u32 %v587_v38, %v426_v39  ;;  %v625_v46 = vld [vmem:[%s798_s1 + $0x108] sm:$0xff]  ;;  %v624_v47 = vld [vmem:[%s798_s1 + $0x100] sm:$0xff]  ;;  %v440_v48 = vld [vmem:[%s800_s0 + $0x10] sm:$0xf] }
  0x10   :  { %387 = vmatpush.bf16.msra.mxu3 %v620_v14  ;;  %v591_v49 = vld [vmem:[%s800_s0 + $0x20] sm:$0xf0]  ;;  %v633_v54 = vld [vmem:[%s799_s2] ss:$0 sm:$0xff] }
  0x11   :  { %359 = vmatpush.bf16.msra.mxu1 %v604_v15  ;;  %v441_v50 = vor.u32 %v591_v49, %v440_v48 }
  0x12   :  { %346 = vmatpush.bf16.msra.mxu0 %v595_v16 }
  0x13   :  { %374 = vmatpush.bf16.msra.mxu2 %v611_v17 }
  0x14   :  { %388 = vmatpush.bf16.msra.mxu3 %v619_v18 }
  0x15   :  { %360 = vmatpush.bf16.msra.mxu1 %v603_v19 }
  0x16   :  { %347 = vmatpush.bf16.msra.mxu0 %v594_v20 }
  0x17   :  { %375 = vmatpush.bf16.msra.mxu2 %v610_v21 }
  0x18   :  { %389 = vmatpush.bf16.msra.mxu3 %v618_v22 }
  0x19   :  { %361 = vmatpush.bf16.msra.mxu1 %v602_v23 }
  0x1a   :  { %348 = vmatpush.bf16.msra.mxu0 %v593_v24 }
  0x1b   :  { %376 = vmatpush.bf16.msra.mxu2 %v609_v25 }
  0x1c   :  { %390 = vmatpush.bf16.msra.mxu3 %v617_v26 }
  0x1d   :  { %362 = vmatpush.bf16.msra.mxu1 %v601_v27 }
  0x1e   :  { %349 = vmatpush.bf16.msra.mxu0 %v592_v28 }
  0x1f   :  { %377 = vmatpush.bf16.msra.mxu2 %v608_v29 }
  0x20   :  { %391 = vmatpush.bf16.msra.mxu3 %v616_v30 }
  0x21   :  { %363 = vmatpush.bf16.msra.mxu1 %v600_v31  ;;  %350 = vmatmul.bf16.vlgmr.msra.gmra.mxu0 %v425_v41 }
  0x22   :  { %402 = vmatpush.bf16.msrb.mxu0 %v627_v40  ;;  %378 = vmatmul.bf16.vlgmr.msra.gmra.mxu2 %v433_v42 }
  0x23   :  { %392 = vmatmul.bf16.vlgmr.msra.gmra.mxu3 %v437_v43 }
  0x24   :  { %364 = vmatmul.bf16.vlgmr.msra.gmra.mxu1 %v429_v44 }
  0x26   :  { %403 = vmatpush.bf16.msrb.mxu0 %v626_v45 }
  0x2a   :  { %404 = vmatpush.bf16.msrb.mxu0 %v625_v46 }
  0x2e   :  { %405 = vmatpush.bf16.msrb.mxu0 %v624_v47 }
  0x31   :  { %586 = vmatmul.msk.bf16.vlgmr.msrb.gmra.mxu0 %vm338_vm0, %v441_v50 }
  0x9e   :  { %v351_v51 = vpop.f32.mrf.mxu0 }
  0x9f   :  { %v352_v56 = vadd.f32 %v633_v54, %v351_v51 }
  0xa1   :  { %v365_v52 = vpop.f32.mrf.mxu1 }
  0xa2   :  { %v366_v60 = vadd.f32 %v365_v52, %v352_v56 }
  0xa5   :  { %v379_v53 = vpop.f32.mrf.mxu2 }
  0xa6   :  { %v353_v55 = vpop.f32.mrf.mxu0  ;;  %v393_v57 = vpop.f32.mrf.mxu3  ;;  %v380_v63 = vadd.f32 %v379_v53, %v366_v60 }
  0xa7   :  { %v354_v58 = vadd.f32 %v633_v54, %v353_v55 }
  0xa8   :  { %v394_v2 = vadd.f32 %v393_v57, %v380_v63 }
  0xa9   :  { %v367_v59 = vpop.f32.mrf.mxu1 }
  0xaa   :  { %v368_v0 = vadd.f32 %v367_v59, %v354_v58 }
  0xad   :  { %v381_v61 = vpop.f32.mrf.mxu2 }
  0xae   :  { %v407_v62 = vpop.f32.mrf.mxu0  ;;  %v382_v1 = vadd.f32 %v381_v61, %v368_v0  ;;  %v395_v3 = vpop.f32.mrf.mxu3 }
  0xaf   :  { %v408_v5 = vadd.f32 %v407_v62, %v394_v2 }
  0xb0   :  { %v396_v4 = vadd.f32 %v395_v3, %v382_v1 }
  0xb1   :  { %v412_v8 = vmax.f32 %v408_v5, 0.0 }
  0xb6   :  { %v409_v6 = vpop.f32.mrf.mxu0 }
  0xb7   :  { %v410_v7 = vadd.f32 %v409_v6, %v396_v4 }
  0xb9   :  { %v413_v9 = vmax.f32 %v410_v7, 0.0 }
  0xbb   :  { %v631_v10 = vpack.c.bf16 %v413_v9, %v412_v8 }
  0xbd   :  { %632 = vst [vmem:[%s801_s3] sm:$0xff] %v631_v10  }

// kernel: alpha_yolonas_forward.11
= control target key start
LH: loop header
LB: loop body
LE: loop exit
PB: predicated region body
PF: predicated region fallthrough
CT: control target
= control target key end

     0   :  { %vm258_vm0 = vcmask 392192   ;;  %s621_s1 = inlined_call_operand.vmem [shape: bf16[432,128], index: 1, kind: input, shape index: {}]   ;;  %s622_s0 = inlined_call_operand.vmem [shape: bf16[16,432], index: 0, kind: input, shape index: {}]   ;;  %s623_s2 = inlined_call_operand.vmem [shape: f32[1,128], index: 2, kind: input, shape index: {}]   ;;  %s624_s3 = inlined_call_operand.vmem [shape: bf16[16,128], index: 3, kind: output, shape index: {}]  }
   0x1   :  { %v464_v0 = vld [vmem:[%s621_s1 + $0x38] sm:$0xff]  ;;  %v463_v3 = vld [vmem:[%s621_s1 + $0x30] sm:$0xff]  ;;  %v462_v7 = vld [vmem:[%s621_s1 + $0x28] sm:$0xff] }
   0x2   :  { %v472_v1 = vld [vmem:[%s621_s1 + $0x78] sm:$0xff]  ;;  %262 = vmatpush.bf16.msra.mxu0 %v464_v0  ;;  %v471_v4 = vld [vmem:[%s621_s1 + $0x70] sm:$0xff]  ;;  %v470_v8 = vld [vmem:[%s621_s1 + $0x68] sm:$0xff] }
   0x3   :  { %v480_v2 = vld [vmem:[%s621_s1 + $0xb8] sm:$0xff]  ;;  %276 = vmatpush.bf16.msra.mxu1 %v472_v1  ;;  %v479_v5 = vld [vmem:[%s621_s1 + $0xb0] sm:$0xff]  ;;  %v478_v9 = vld [vmem:[%s621_s1 + $0xa8] sm:$0xff] }
   0x4   :  { %290 = vmatpush.bf16.msra.mxu2 %v480_v2  ;;  %v483_v6 = vld [vmem:[%s621_s1 + $0xd0] sm:$0xff]  ;;  %v482_v10 = vld [vmem:[%s621_s1 + $0xc8] sm:$0xff]  ;;  %v461_v11 = vld [vmem:[%s621_s1 + $0x20] sm:$0xff] }
   0x5   :  { %309 = vmatpush.bf16.msra.mxu3 %v483_v6  ;;  %v469_v12 = vld [vmem:[%s621_s1 + $0x60] sm:$0xff]  ;;  %v454_v15 = vld [vmem:[%s622_s0 + $0xc] sm:$0xf]  ;;  %v340_v16 = vld [vmem:[%s622_s0 + $0x18] sm:$0xf0] }
   0x6   :  { %263 = vmatpush.bf16.msra.mxu0 %v463_v3  ;;  %v477_v13 = vld [vmem:[%s621_s1 + $0xa0] sm:$0xff]  ;;  %v460_v17 = vld [vmem:[%s621_s1 + $0x18] sm:$0xff]  ;;  %v343_v20 = vor.u32 %v454_v15, %v340_v16  ;;  %v459_v21 = vld [vmem:[%s621_s1 + $0x10] sm:$0xff] }
   0x7   :  { %277 = vmatpush.bf16.msra.mxu1 %v471_v4  ;;  %v481_v14 = vld [vmem:[%s621_s1 + $0xc0] sm:$0xff]  ;;  %v468_v18 = vld [vmem:[%s621_s1 + $0x58] sm:$0xff]  ;;  %v467_v22 = vld [vmem:[%s621_s1 + $0x50] sm:$0xff] }
   0x8   :  { %291 = vmatpush.bf16.msra.mxu2 %v479_v5  ;;  %v476_v19 = vld [vmem:[%s621_s1 + $0x98] sm:$0xff]  ;;  %v475_v23 = vld [vmem:[%s621_s1 + $0x90] sm:$0xff]  ;;  %v458_v24 = vld [vmem:[%s621_s1 + $0x8] sm:$0xff] }
   0x9   :  { %310 = vmatpush.bf16.msra.mxu3 %v482_v10  ;;  %v466_v25 = vld [vmem:[%s621_s1 + $0x48] sm:$0xff]  ;;  %v457_v27 = vld [vmem:[%s621_s1] sm:$0xff]  ;;  %v455_v30 = vld [vmem:[%s622_s0 + $0xc] sm:$0xf0] }
   0xa   :  { %264 = vmatpush.bf16.msra.mxu0 %v462_v7  ;;  %v474_v26 = vld [vmem:[%s621_s1 + $0x88] sm:$0xff]  ;;  %v465_v28 = vld [vmem:[%s621_s1 + $0x40] sm:$0xff]  ;;  %v332_v32 = vld [vmem:[%s622_s0 + $0x10] sm:$0xf0] }
   0xb   :  { %278 = vmatpush.bf16.msra.mxu1 %v470_v8  ;;  %v330_v29 = vld [vmem:[%s622_s0] sm:$0xf]  ;;  %v453_v31 = vld [vmem:[%s622_s0 + $0x4] sm:$0xf]  ;;  %v338_v34 = vld [vmem:[%s622_s0 + $0x8] sm:$0xf] }
   0xc   :  { %292 = vmatpush.bf16.msra.mxu2 %v478_v9  ;;  %v473_v33 = vld [vmem:[%s621_s1 + $0x80] sm:$0xff]  ;;  %v456_v35 = vld [vmem:[%s622_s0 + $0x14] sm:$0xf0]  ;;  %v331_v36 = vor.u32 %v455_v30, %v330_v29  ;;  %v335_v37 = vor.u32 %v453_v31, %v332_v32 }
   0xd   :  { %311 = vmatpush.bf16.msra.mxu3 %v481_v14  ;;  %v339_v38 = vor.u32 %v456_v35, %v338_v34  ;;  %v489_v39 = vld [vmem:[%s623_s2] ss:$0 sm:$0xff] }
   0xe   :  { %265 = vmatpush.bf16.msra.mxu0 %v461_v11 }
   0xf   :  { %279 = vmatpush.bf16.msra.mxu1 %v469_v12 }
  0x10   :  { %293 = vmatpush.bf16.msra.mxu2 %v477_v13  ;;  %452 = vmatmul.msk.bf16.vlgmr.msra.gmra.mxu3 %vm258_vm0, %v343_v20 }
  0x12   :  { %266 = vmatpush.bf16.msra.mxu0 %v460_v17 }
  0x13   :  { %280 = vmatpush.bf16.msra.mxu1 %v468_v18 }
  0x14   :  { %294 = vmatpush.bf16.msra.mxu2 %v476_v19 }
  0x16   :  { %267 = vmatpush.bf16.msra.mxu0 %v459_v21 }
  0x17   :  { %281 = vmatpush.bf16.msra.mxu1 %v467_v22 }
  0x18   :  { %295 = vmatpush.bf16.msra.mxu2 %v475_v23 }
  0x1a   :  { %268 = vmatpush.bf16.msra.mxu0 %v458_v24 }
  0x1b   :  { %282 = vmatpush.bf16.msra.mxu1 %v466_v25 }
  0x1c   :  { %296 = vmatpush.bf16.msra.mxu2 %v474_v26 }
  0x1e   :  { %269 = vmatpush.bf16.msra.mxu0 %v457_v27 }
  0x1f   :  { %283 = vmatpush.bf16.msra.mxu1 %v465_v28 }
  0x20   :  { %297 = vmatpush.bf16.msra.mxu2 %v473_v33 }
  0x21   :  { %270 = vmatmul.bf16.vlgmr.msra.gmra.mxu0 %v331_v36 }
  0x22   :  { %284 = vmatmul.bf16.vlgmr.msra.gmra.mxu1 %v335_v37 }
  0x23   :  { %298 = vmatmul.bf16.vlgmr.msra.gmra.mxu2 %v339_v38 }
  0x93   :  { %v313_v43 = vpop.f32.mrf.mxu3 }
  0x9b   :  { %v315_v54 = vpop.f32.mrf.mxu3 }
  0x9e   :  { %v271_v40 = vpop.f32.mrf.mxu0 }
  0x9f   :  { %v285_v41 = vpop.f32.mrf.mxu1  ;;  %v272_v42 = vadd.f32 %v489_v39, %v271_v40 }
  0xa1   :  { %v286_v45 = vadd.f32 %v285_v41, %v272_v42 }
  0xa6   :  { %v299_v44 = vpop.f32.mrf.mxu2  ;;  %v273_v46 = vpop.f32.mrf.mxu0 }
  0xa7   :  { %v274_v47 = vadd.f32 %v489_v39, %v273_v46  ;;  %v300_v48 = vadd.f32 %v299_v44, %v286_v45  ;;  %v287_v49 = vpop.f32.mrf.mxu1 }
  0xa9   :  { %v288_v50 = vadd.f32 %v287_v49, %v274_v47  ;;  %v314_v52 = vadd.f32 %v313_v43, %v300_v48 }
  0xab   :  { %v318_v56 = vmax.f32 %v314_v52, 0.0 }
  0xae   :  { %v301_v51 = vpop.f32.mrf.mxu2 }
  0xaf   :  { %v302_v53 = vadd.f32 %v301_v51, %v288_v50 }
  0xb1   :  { %v316_v55 = vadd.f32 %v315_v54, %v302_v53 }
  0xb3   :  { %v319_v57 = vmax.f32 %v316_v55, 0.0 }
  0xb5   :  { %v487_v58 = vpack.c.bf16 %v319_v57, %v318_v56 }
  0xb7   :  { %488 = vst [vmem:[%s624_s3] sm:$0xff] %v487_v58  }

// kernel: alpha_yolonas_forward.15
= control target key start
LH: loop header
LB: loop body
LE: loop exit
PB: predicated region body
PF: predicated region fallthrough
CT: control target
= control target key end

     0   :  { %vm155_vm0 = vcmask 556032   ;;  %s422_s30 = smov 4   ;;  %s423_s5 = smov 124   ;;  %vm239_vm1 = vcmask 7168   ;;  %vm242_vm2 = vcmask 15360   ;;  %vm245_vm3 = vcmask 23552   ;;  %s631_s1 = inlined_call_operand.vmem [shape: bf16[128,256], index: 1, kind: input, shape index: {}]   ;;  %s632_s0 = inlined_call_operand.vmem [shape: bf16[16,128], index: 0, kind: input, shape index: {}]   ;;  %s633_s3 = inlined_call_operand.vmem [shape: f32[128,128], index: 3, kind: input, shape index: {}]   ;;  %s634_s2 = inlined_call_operand.vmem [shape: f32[1,256], index: 2, kind: input, shape index: {}]   ;;  %s635_s4 = inlined_call_operand.vmem [shape: f32[16,128], index: 4, kind: output, shape index: {}]  }
   0x1   :  { %v402_v0 = vld [vmem:[%s631_s1 + $0x74] sm:$0xf]  ;;  %v381_v1 = vld [vmem:[%s631_s1 + $0x78] sm:$0xf0]  ;;  %v400_v2 = vld [vmem:[%s631_s1 + $0x64] sm:$0xf] }
   0x2   :  { %v384_v3 = vor.u32 %v402_v0, %v381_v1  ;;  %v373_v4 = vld [vmem:[%s631_s1 + $0x68] sm:$0xf0]  ;;  %v398_v6 = vld [vmem:[%s631_s1 + $0x54] sm:$0xf]  ;;  %v365_v7 = vld [vmem:[%s631_s1 + $0x58] sm:$0xf0] }
   0x3   :  { %v376_v5 = vor.u32 %v400_v2, %v373_v4  ;;  %v368_v8 = vor.u32 %v398_v6, %v365_v7  ;;  %v396_v9 = vld [vmem:[%s631_s1 + $0x44] sm:$0xf]  ;;  %v357_v10 = vld [vmem:[%s631_s1 + $0x48] sm:$0xf0]  ;;  %v394_v12 = vld [vmem:[%s631_s1 + $0x34] sm:$0xf] }
   0x4   :  { %141 = vmatpush.bf16.msra.mxu1 %v384_v3  ;;  %v360_v11 = vor.u32 %v396_v9, %v357_v10  ;;  %v349_v13 = vld [vmem:[%s631_s1 + $0x38] sm:$0xf0]  ;;  %v392_v15 = vld [vmem:[%s631_s1 + $0x24] sm:$0xf]  ;;  %v341_v16 = vld [vmem:[%s631_s1 + $0x28] sm:$0xf0] }
   0x5   :  { %v352_v14 = vor.u32 %v394_v12, %v349_v13  ;;  %v344_v17 = vor.u32 %v392_v15, %v341_v16  ;;  %v390_v18 = vld [vmem:[%s631_s1 + $0x14] sm:$0xf]  ;;  %v333_v19 = vld [vmem:[%s631_s1 + $0x18] sm:$0xf0]  ;;  %v388_v21 = vld [vmem:[%s631_s1 + $0x4] sm:$0xf] }
   0x6   :  { %v336_v20 = vor.u32 %v390_v18, %v333_v19  ;;  %v325_v22 = vld [vmem:[%s631_s1 + $0x8] sm:$0xf0]  ;;  %v500_v24 = vld [vmem:[%s632_s0] sm:$0xff]  ;;  %v185_v25 = vld [vmem:[%s633_s3 + $0x78] sm:$0xff]  ;;  %vm302_vm8 = vcmask 31744  }
   0x7   :  { %v328_v23 = vor.u32 %v388_v21, %v325_v22  ;;  %v184_v26 = vld [vmem:[%s633_s3 + $0x70] sm:$0xff]  ;;  %186 = vmatpush.msra.mxu2 %v185_v25  ;;  %v183_v27 = vld [vmem:[%s633_s3 + $0x68] sm:$0xff]  ;;  %v182_v28 = vld [vmem:[%s633_s3 + $0x60] sm:$0xff] }
   0x8   :  { %142 = vmatpush.bf16.msra.mxu1 %v376_v5  ;;  %v181_v29 = vld [vmem:[%s633_s3 + $0x58] sm:$0xff]  ;;  %v180_v30 = vld [vmem:[%s633_s3 + $0x50] sm:$0xff]  ;;  %v179_v31 = vld [vmem:[%s633_s3 + $0x48] sm:$0xff] }
   0x9   :  { %187 = vmatpush.msra.mxu2 %v184_v26  ;;  %v178_v32 = vld [vmem:[%s633_s3 + $0x40] sm:$0xff]  ;;  %v177_v34 = vld [vmem:[%s633_s3 + $0x38] sm:$0xff]  ;;  %v176_v42 = vld [vmem:[%s633_s3 + $0x30] sm:$0xff] }
   0xa   :  { %v530_v33 = vld [vmem:[%s634_s2] sm:$0x3]  ;;  %v175_v43 = vld [vmem:[%s633_s3 + $0x28] sm:$0xff]  ;;  %v173_v45 = vld [vmem:[%s633_s3 + $0x18] sm:$0xff] }
   0xb   :  { %188 = vmatpush.msra.mxu2 %v183_v27  ;;  %v38_v35 = vperm.slane %v530_v33, 1  ;;  %v174_v44 = vld [vmem:[%s633_s3 + $0x20] sm:$0xff]  ;;  %v172_v46 = vld [vmem:[%s633_s3 + $0x10] sm:$0xff]  ;;  %v171_v47 = vld [vmem:[%s633_s3 + $0x8] sm:$0xff] }
   0xc   :  { %143 = vmatpush.bf16.msra.mxu1 %v368_v8  ;;  %v170_v48 = vld [vmem:[%s633_s3] sm:$0xff]  ;;  %v379_v59 = vld [vmem:[%s631_s1 + $0x70] sm:$0xf]  ;;  %v403_v60 = vld [vmem:[%s631_s1 + $0x74] sm:$0xf0] }
   0xd   :  { %189 = vmatpush.msra.mxu2 %v182_v28  ;;  %v371_v61 = vld [vmem:[%s631_s1 + $0x60] sm:$0xf]  ;;  %v380_v62 = vor.u32 %v403_v60, %v379_v59  ;;  %v401_v63 = vld [vmem:[%s631_s1 + $0x64] sm:$0xf0]  ;;  %v363_v1 = vld [vmem:[%s631_s1 + $0x50] sm:$0xf] }
   0xe   :  { %v372_v0 = vor.u32 %v401_v63, %v371_v61  ;;  %v399_v2 = vld [vmem:[%s631_s1 + $0x54] sm:$0xf0]  ;;  %v355_v4 = vld [vmem:[%s631_s1 + $0x40] sm:$0xf]  ;;  %v397_v5 = vld [vmem:[%s631_s1 + $0x44] sm:$0xf0] }
   0xf   :  { %190 = vmatpush.msra.mxu2 %v181_v29  ;;  %127 = vmatpush.bf16.msra.mxu0 %v380_v62  ;;  %v364_v3 = vor.u32 %v399_v2, %v363_v1  ;;  %v356_v6 = vor.u32 %v397_v5, %v355_v4  ;;  %v347_v7 = vld [vmem:[%s631_s1 + $0x30] sm:$0xf]  ;;  %v395_v8 = vld [vmem:[%s631_s1 + $0x34] sm:$0xf0]  ;;  %v339_v10 = vld [vmem:[%s631_s1 + $0x20] sm:$0xf] }
  0x10   :  { %144 = vmatpush.bf16.msra.mxu1 %v360_v11  ;;  %v348_v9 = vor.u32 %v395_v8, %v347_v7  ;;  %v393_v11 = vld [vmem:[%s631_s1 + $0x24] sm:$0xf0]  ;;  %v331_v13 = vld [vmem:[%s631_s1 + $0x10] sm:$0xf]  ;;  %v37_v29 = vperm.slane %v530_v33, 0 }
  0x11   :  { %191 = vmatpush.msra.mxu2 %v180_v30  ;;  %v340_v12 = vor.u32 %v393_v11, %v339_v10  ;;  %v389_v18 = vld [vmem:[%s631_s1 + $0x4] sm:$0xf0] }
  0x13   :  { %192 = vmatpush.msra.mxu2 %v179_v31  ;;  %128 = vmatpush.bf16.msra.mxu0 %v372_v0 }
  0x14   :  { %145 = vmatpush.bf16.msra.mxu1 %v352_v14  ;;  %v391_v14 = vld [vmem:[%s631_s1 + $0x14] sm:$0xf0] }
  0x15   :  { %193 = vmatpush.msra.mxu2 %v178_v32  ;;  %v332_v16 = vor.u32 %v391_v14, %v331_v13 }
  0x17   :  { %194 = vmatpush.msra.mxu2 %v177_v34  ;;  %129 = vmatpush.bf16.msra.mxu0 %v364_v3  ;;  %v223_v34 = vlaneseq }
  0x18   :  { %146 = vmatpush.bf16.msra.mxu1 %v344_v17  ;;  %v323_v17 = vld [vmem:[%s631_s1] sm:$0xf] }
  0x19   :  { %195 = vmatpush.msra.mxu2 %v176_v42  ;;  %v324_v19 = vor.u32 %v389_v18, %v323_v17  ;;  %v263_v3 = vand.u32 127, %v223_v34 }
  0x1b   :  { %196 = vmatpush.msra.mxu2 %v175_v43  ;;  %130 = vmatpush.bf16.msra.mxu0 %v356_v6  ;;  %vm306_vm11 = vcmp.lt.s32.totalorder %v263_v3, 84  ;;  %vm305_vm12 = vcmp.lt.s32.totalorder %v263_v3, 4 }
  0x1c   :  { %147 = vmatpush.bf16.msra.mxu1 %v336_v20 }
  0x1d   :  { %197 = vmatpush.msra.mxu2 %v174_v44 }
  0x1f   :  { %198 = vmatpush.msra.mxu2 %v173_v45  ;;  %131 = vmatpush.bf16.msra.mxu0 %v348_v9 }
  0x20   :  { %148 = vmatpush.bf16.msra.mxu1 %v328_v23 }
  0x21   :  { %199 = vmatpush.msra.mxu2 %v172_v46 }
  0x23   :  { %149 = vmatmul.bf16.vlgmr.msra.gmra.mxu1 %v500_v24  ;;  %200 = vmatpush.msra.mxu2 %v171_v47 }
  0x24   :  { %132 = vmatpush.bf16.msra.mxu0 %v340_v12 }
  0x25   :  { %201 = vmatpush.msra.mxu2 %v170_v48 }
  0x28   :  { %133 = vmatpush.bf16.msra.mxu0 %v332_v16 }
  0x2c   :  { %134 = vmatpush.bf16.msra.mxu0 %v324_v19 }
  0x2f   :  { %135 = vmatmul.bf16.vlgmr.msra.gmra.mxu0 %v500_v24 }
  0xa0   :  { %v150_v36 = vpop.f32.mrf.mxu1 }
  0xa1   :  { %v151_v37 = vadd.f32 %v150_v36, %v38_v35  ;;  %v224_v36 = vshrl.u32 %v223_v34, 7 }
  0xa3   :  { %v156_v38 = vsel %vm155_vm0, %v151_v37, -inf }
  0xa4   :  { %157 = vmax.xlane.f32.xlu0 %v156_v38  ;;  %v226_v38 = vcvt.s32.f32 %v224_v36 }
  0xa8   :  { %v152_v39 = vpop.f32.mrf.mxu1 }
  0xa9   :  { %v153_v40 = vadd.f32 %v152_v39, %v38_v35 }
  0xab   :  { %v159_v41 = vsel %vm155_vm0, %v153_v40, -inf }
  0xac   :  { %160 = vmax.xlane.f32.xlu0 %v159_v41  ;;  %v136_v28 = vpop.f32.mrf.mxu0  ;;  %v225_v41 = vadd.s32 8, %v224_v36 }
  0xad   :  { %v137_v30 = vadd.f32 %v136_v28, %v37_v29 }
  0xae   :  { %v227_v44 = vcvt.s32.f32 %v225_v41 }
  0xaf   :  { %v385_v31 = vmul.f32 -1.442695, %v137_v30 }
  0xb0   :  { %v232_v47 = vfloor.f32 %v227_v44 }
  0xb4   :  { %v138_v32 = vpop.f32.mrf.mxu0 }
  0xb5   :  { %v139_v35 = vadd.f32 %v138_v32, %v37_v29 }
  0xb7   :  { %v386_v24 = vmul.f32 -1.442695, %v139_v35 }
 0x117   :  { %v158_v49 = vpop.xlane.xlu0 %157 }
 0x118   :  { %v162_v50 = vsub.f32 %v151_v37, %v158_v49 }
 0x11a   :  { %v164_v51 = vmin.f32 %v162_v50, 0.0  ;;  %v234_v50 = vsub.f32 %v227_v44, %v232_v47 }
 0x11c   :  { %v166_v52 = vmul.f32 1.442695, %v164_v51 }
 0x11e   :  { %406 = vpow2.f32 %v166_v52 }
 0x11f   :  { %v161_v53 = vpop.xlane.xlu0 %160 }
 0x120   :  { %v163_v54 = vsub.f32 %v153_v40, %v161_v53  ;;  %v231_v40 = vfloor.f32 %v226_v38 }
 0x122   :  { %v165_v55 = vmin.f32 %v163_v54, 0.0  ;;  %v233_v43 = vsub.f32 %v226_v38, %v231_v40  ;;  %v236_v54 = vfloor.f32 %v234_v50 }
 0x124   :  { %v407_v56 = vpop.eup %406  ;;  %v168_v57 = vmul.f32 1.442695, %v165_v55  ;;  %v235_v46 = vfloor.f32 %v233_v43 }
 0x125   :  { %202 = vmatmul.f32.vlgmr.msra.gmra.mxu2 %v407_v56 }
 0x126   :  { %408 = vpow2.f32 %v168_v57  ;;  %v237_v49 = vsub.f32 %v233_v43, %v235_v46 }
 0x128   :  { %v240_v53 = vsel %vm239_vm1, %v237_v49, %v235_v46 }
 0x129   :  { %v243_v56 = vsel %vm242_vm2, %v240_v53, %v237_v49 }
 0x12a   :  { %v246_v59 = vsel %vm245_vm3, %v243_v56, %v235_v46 }
 0x12b   :  { %v248_v2 = vadd.f32 0.5, %v246_v59 }
 0x12c   :  { %v409_v58 = vpop.eup %408 }
 0x12d   :  { %205 = vmatmul.f32.gmra.mxu2 %v409_v58  ;;  %v238_v58 = vsub.f32 %v234_v50, %v236_v54 }
 0x12f   :  { %v241_v1 = vsel %vm239_vm1, %v238_v58, %v236_v54 }
 0x130   :  { %v244_v6 = vsel %vm242_vm2, %v241_v1, %v238_v58 }
 0x131   :  { %v247_v11 = vsel %vm245_vm3, %v244_v6, %v236_v54 }
 0x132   :  { %v249_v18 = vadd.f32 0.5, %v247_v11 }
 0x1a8   :  { %v203_v15 = vpop.f32.mrf.mxu2 }
 0x1a9   :  { %410 = vrcp.f32 %v203_v15 }
 0x1af   :  { %v411_v20 = vpop.eup %410 }
 0x1b0   :  { %213 = vrot.lane.b32.xlu1 %v411_v20, %s422_s30  ;;  %v206_v21 = vpop.f32.mrf.mxu2 }
 0x1b1   :  { %412 = vrcp.f32 %v206_v21 }
 0x1b2   :  { %414 = vpow2.f32 %v385_v31 }
 0x1b3   :  { %416 = vpow2.f32 %v386_v24 }
 0x1b7   :  { %v413_v22 = vpop.eup %412 }
 0x1b8   :  { %215 = vrot.lane.b32.xlu1 %v413_v22, %s422_s30  ;;  %v415_v37 = vpop.eup %414 }
 0x1b9   :  { %v270_v39 = vadd.f32 1.0, %v415_v37  ;;  %v417_v42 = vpop.eup %416 }
 0x1ba   :  { %v271_v45 = vadd.f32 1.0, %v417_v42 }
 0x1bb   :  { %418 = vrcp.f32 %v270_v39  ;;  %vm277_vm4 = vweird.f32 %v270_v39  ;;  %v283_v60 = vand.u32 2147483648, %v270_v39  ;;  %v281_v63 = vand.u32 2147483647, %v270_v39 }
 0x1bc   :  { %420 = vrcp.f32 %v271_v45  ;;  %vm292_vm9 = vweird.f32 %v271_v45  ;;  %v298_v12 = vand.u32 2147483648, %v271_v45 }
 0x1bd   :  { %v284_v4 = vor.u32 1.1754944e-38, %v283_v60  ;;  %vm282_vm7 = vcmp.eq.f32.partialorder %v281_v63, 8.507059e+37 }
 0x1be   :  { %v299_v20 = vor.u32 1.1754944e-38, %v298_v12 }
 0x1c1   :  { %v419_v33 = vpop.eup %418 }
 0x1c2   :  { %v273_v48 = vmul.f32 %v419_v33, %v270_v39  ;;  %v421_v52 = vpop.eup %420  ;;  %vm278_vm5 = vweird.f32 %v419_v33 }
 0x1c3   :  { %v288_v55 = vmul.f32 %v421_v52, %v271_v45  ;;  %vm610_vm6 = vmor %vm277_vm4, %vm278_vm5  ;;  %vm293_vm10 = vweird.f32 %v421_v52 }
 0x1c4   :  { %v274_v51 = vsub.f32 1.0, %v273_v48  ;;  %vm294_vm13 = vmor %vm292_vm9, %vm293_vm10 }
 0x1c5   :  { %v289_v61 = vsub.f32 1.0, %v288_v55 }
 0x1c6   :  { %v275_v57 = vmul.f32 %v419_v33, %v274_v51 }
 0x1c7   :  { %v290_v7 = vmul.f32 %v421_v52, %v289_v61 }
 0x1c8   :  { %v276_v62 = vadd.f32 %v419_v33, %v275_v57 }
 0x1c9   :  { %v291_v14 = vadd.f32 %v421_v52, %v290_v7 }
 0x1ca   :  { %v280_v5 = vsel %vm610_vm6, %v419_v33, %v276_v62 }
 0x1cb   :  { %v285_v10 = vsel %vm282_vm7, %v284_v4, %v280_v5 }
 0x1cc   :  { %v307_v17 = vsel %vm306_vm11, %v285_v10, 0.0 }
 0x222   :  { %v214_v23 = vpop.permute.xlu1 %213 }
 0x223   :  { %v219_v25 = vmul.f32 %v214_v23, %v203_v15  ;;  %v296_v15 = vand.u32 2147483647, %v271_v45 }
 0x225   :  { %252 = vrot.lane.b32.xlu2 %v219_v25, %s423_s5  ;;  %vm297_vm14 = vcmp.eq.f32.partialorder %v296_v15, 8.507059e+37 }
 0x22a   :  { %v216_v26 = vpop.permute.xlu1 %215 }
 0x22b   :  { %v220_v27 = vmul.f32 %v216_v26, %v206_v21  ;;  %v295_v21 = vsel %vm294_vm13, %v421_v52, %v291_v14 }
 0x22c   :  { %v300_v25 = vsel %vm297_vm14, %v299_v20, %v295_v21 }
 0x22d   :  { %254 = vrot.lane.b32.xlu2 %v220_v27, %s423_s5  ;;  %v308_v28 = vsel %vm306_vm11, %v300_v25, 0.0 }
 0x27f   :  { %v253_v8 = vpop.permute.xlu2 %252 }
 0x280   :  { %v258_v9 = vadd.f32 %v253_v8, %v248_v2 }
 0x282   :  { %v260_v13 = vmul.f32 32.0, %v258_v9 }
 0x284   :  { %v303_v16 = vsel %vm302_vm8, %v260_v13, 0.0 }
 0x285   :  { %v309_v19 = vsel %vm305_vm12, %v303_v16, %v307_v17 }
 0x286   :  { %311 = vst [vmem:[%s635_s4] sm:$0xff] %v309_v19 }
 0x287   :  { %v255_v22 = vpop.permute.xlu2 %254 }
 0x288   :  { %v259_v23 = vadd.f32 %v255_v22, %v249_v18 }
 0x28a   :  { %v261_v26 = vmul.f32 32.0, %v259_v23 }
 0x28c   :  { %v304_v27 = vsel %vm302_vm8, %v261_v26, 0.0 }
 0x28d   :  { %v310_v29 = vsel %vm305_vm12, %v304_v27, %v308_v28 }
 0x28e   :  { %312 = vst [vmem:[%s635_s4 + $0x8] sm:$0xff] %v310_v29 }

// kernel: alpha_yolonas_forward.14
= control target key start
LH: loop header
LB: loop body
LE: loop exit
PB: predicated region body
PF: predicated region fallthrough
CT: control target
= control target key end

     0   :  { %vm155_vm0 = vcmask 556032   ;;  %s450_s30 = smov 4   ;;  %s451_s5 = smov 124   ;;  %vm261_vm3 = vcmask 7168   ;;  %vm264_vm4 = vcmask 15360   ;;  %vm267_vm5 = vcmask 23552   ;;  %s663_s1 = inlined_call_operand.vmem [shape: bf16[128,256], index: 1, kind: input, shape index: {}]   ;;  %s664_s0 = inlined_call_operand.vmem [shape: bf16[16,128], index: 0, kind: input, shape index: {}]   ;;  %s665_s3 = inlined_call_operand.vmem [shape: f32[128,128], index: 3, kind: input, shape index: {}]   ;;  %s666_s2 = inlined_call_operand.vmem [shape: f32[1,256], index: 2, kind: input, shape index: {}]   ;;  %s667_s4 = inlined_call_operand.vmem [shape: f32[16,128], index: 4, kind: output, shape index: {}]  }
   0x1   :  { %v424_v0 = vld [vmem:[%s663_s1 + $0x74] sm:$0xf]  ;;  %v403_v1 = vld [vmem:[%s663_s1 + $0x78] sm:$0xf0]  ;;  %v422_v2 = vld [vmem:[%s663_s1 + $0x64] sm:$0xf] }
   0x2   :  { %v406_v3 = vor.u32 %v424_v0, %v403_v1  ;;  %v395_v4 = vld [vmem:[%s663_s1 + $0x68] sm:$0xf0]  ;;  %v420_v6 = vld [vmem:[%s663_s1 + $0x54] sm:$0xf]  ;;  %v387_v7 = vld [vmem:[%s663_s1 + $0x58] sm:$0xf0] }
   0x3   :  { %v398_v5 = vor.u32 %v422_v2, %v395_v4  ;;  %v390_v8 = vor.u32 %v420_v6, %v387_v7  ;;  %v418_v9 = vld [vmem:[%s663_s1 + $0x44] sm:$0xf]  ;;  %v379_v10 = vld [vmem:[%s663_s1 + $0x48] sm:$0xf0]  ;;  %v416_v12 = vld [vmem:[%s663_s1 + $0x34] sm:$0xf] }
   0x4   :  { %141 = vmatpush.bf16.msra.mxu1 %v406_v3  ;;  %v382_v11 = vor.u32 %v418_v9, %v379_v10  ;;  %v371_v13 = vld [vmem:[%s663_s1 + $0x38] sm:$0xf0]  ;;  %v414_v15 = vld [vmem:[%s663_s1 + $0x24] sm:$0xf]  ;;  %v363_v16 = vld [vmem:[%s663_s1 + $0x28] sm:$0xf0] }
   0x5   :  { %v374_v14 = vor.u32 %v416_v12, %v371_v13  ;;  %v366_v17 = vor.u32 %v414_v15, %v363_v16  ;;  %v412_v18 = vld [vmem:[%s663_s1 + $0x14] sm:$0xf]  ;;  %v355_v19 = vld [vmem:[%s663_s1 + $0x18] sm:$0xf0]  ;;  %v410_v21 = vld [vmem:[%s663_s1 + $0x4] sm:$0xf] }
   0x6   :  { %v358_v20 = vor.u32 %v412_v18, %v355_v19  ;;  %v347_v22 = vld [vmem:[%s663_s1 + $0x8] sm:$0xf0]  ;;  %v530_v24 = vld [vmem:[%s664_s0] sm:$0xff]  ;;  %v185_v25 = vld [vmem:[%s665_s3 + $0x78] sm:$0xff]  ;;  %vm324_vm10 = vcmask 31744  }
   0x7   :  { %v350_v23 = vor.u32 %v410_v21, %v347_v22  ;;  %v184_v26 = vld [vmem:[%s665_s3 + $0x70] sm:$0xff]  ;;  %186 = vmatpush.msra.mxu2 %v185_v25  ;;  %v183_v27 = vld [vmem:[%s665_s3 + $0x68] sm:$0xff]  ;;  %v182_v28 = vld [vmem:[%s665_s3 + $0x60] sm:$0xff] }
   0x8   :  { %142 = vmatpush.bf16.msra.mxu1 %v398_v5  ;;  %v181_v29 = vld [vmem:[%s665_s3 + $0x58] sm:$0xff]  ;;  %v180_v30 = vld [vmem:[%s665_s3 + $0x50] sm:$0xff]  ;;  %v179_v31 = vld [vmem:[%s665_s3 + $0x48] sm:$0xff] }
   0x9   :  { %187 = vmatpush.msra.mxu2 %v184_v26  ;;  %v178_v32 = vld [vmem:[%s665_s3 + $0x40] sm:$0xff]  ;;  %v177_v34 = vld [vmem:[%s665_s3 + $0x38] sm:$0xff]  ;;  %v176_v42 = vld [vmem:[%s665_s3 + $0x30] sm:$0xff] }
   0xa   :  { %v560_v33 = vld [vmem:[%s666_s2] sm:$0x3]  ;;  %v175_v43 = vld [vmem:[%s665_s3 + $0x28] sm:$0xff]  ;;  %v173_v45 = vld [vmem:[%s665_s3 + $0x18] sm:$0xff] }
   0xb   :  { %188 = vmatpush.msra.mxu2 %v183_v27  ;;  %v38_v35 = vperm.slane %v560_v33, 1  ;;  %v174_v44 = vld [vmem:[%s665_s3 + $0x20] sm:$0xff]  ;;  %v172_v46 = vld [vmem:[%s665_s3 + $0x10] sm:$0xff]  ;;  %v171_v47 = vld [vmem:[%s665_s3 + $0x8] sm:$0xff] }
   0xc   :  { %143 = vmatpush.bf16.msra.mxu1 %v390_v8  ;;  %v170_v48 = vld [vmem:[%s665_s3] sm:$0xff]  ;;  %v401_v59 = vld [vmem:[%s663_s1 + $0x70] sm:$0xf]  ;;  %v425_v60 = vld [vmem:[%s663_s1 + $0x74] sm:$0xf0] }
   0xd   :  { %189 = vmatpush.msra.mxu2 %v182_v28  ;;  %v393_v61 = vld [vmem:[%s663_s1 + $0x60] sm:$0xf]  ;;  %v402_v62 = vor.u32 %v425_v60, %v401_v59  ;;  %v423_v63 = vld [vmem:[%s663_s1 + $0x64] sm:$0xf0]  ;;  %v385_v1 = vld [vmem:[%s663_s1 + $0x50] sm:$0xf] }
   0xe   :  { %v394_v0 = vor.u32 %v423_v63, %v393_v61  ;;  %v421_v2 = vld [vmem:[%s663_s1 + $0x54] sm:$0xf0]  ;;  %v377_v4 = vld [vmem:[%s663_s1 + $0x40] sm:$0xf]  ;;  %v419_v5 = vld [vmem:[%s663_s1 + $0x44] sm:$0xf0] }
   0xf   :  { %190 = vmatpush.msra.mxu2 %v181_v29  ;;  %127 = vmatpush.bf16.msra.mxu0 %v402_v62  ;;  %v386_v3 = vor.u32 %v421_v2, %v385_v1  ;;  %v378_v6 = vor.u32 %v419_v5, %v377_v4  ;;  %v369_v7 = vld [vmem:[%s663_s1 + $0x30] sm:$0xf]  ;;  %v417_v8 = vld [vmem:[%s663_s1 + $0x34] sm:$0xf0]  ;;  %v361_v10 = vld [vmem:[%s663_s1 + $0x20] sm:$0xf] }
  0x10   :  { %144 = vmatpush.bf16.msra.mxu1 %v382_v11  ;;  %v370_v9 = vor.u32 %v417_v8, %v369_v7  ;;  %v415_v11 = vld [vmem:[%s663_s1 + $0x24] sm:$0xf0]  ;;  %v353_v13 = vld [vmem:[%s663_s1 + $0x10] sm:$0xf]  ;;  %v452_v28 = vmov 4.0  }
  0x11   :  { %191 = vmatpush.msra.mxu2 %v180_v30  ;;  %v362_v12 = vor.u32 %v415_v11, %v361_v10  ;;  %v411_v18 = vld [vmem:[%s663_s1 + $0x4] sm:$0xf0] }
  0x13   :  { %192 = vmatpush.msra.mxu2 %v179_v31  ;;  %128 = vmatpush.bf16.msra.mxu0 %v394_v0 }
  0x14   :  { %145 = vmatpush.bf16.msra.mxu1 %v374_v14  ;;  %v413_v14 = vld [vmem:[%s663_s1 + $0x14] sm:$0xf0] }
  0x15   :  { %193 = vmatpush.msra.mxu2 %v178_v32  ;;  %v354_v16 = vor.u32 %v413_v14, %v353_v13  ;;  %v223_v32 = vlaneseq }
  0x17   :  { %194 = vmatpush.msra.mxu2 %v177_v34  ;;  %129 = vmatpush.bf16.msra.mxu0 %v386_v3  ;;  %v453_v34 = vmov 2.0  }
  0x18   :  { %146 = vmatpush.bf16.msra.mxu1 %v366_v17  ;;  %v345_v17 = vld [vmem:[%s663_s1] sm:$0xf] }
  0x19   :  { %195 = vmatpush.msra.mxu2 %v176_v42  ;;  %v346_v19 = vor.u32 %v411_v18, %v345_v17 }
  0x1b   :  { %196 = vmatpush.msra.mxu2 %v175_v43  ;;  %130 = vmatpush.bf16.msra.mxu0 %v378_v6 }
  0x1c   :  { %147 = vmatpush.bf16.msra.mxu1 %v358_v20 }
  0x1d   :  { %197 = vmatpush.msra.mxu2 %v174_v44 }
  0x1f   :  { %198 = vmatpush.msra.mxu2 %v173_v45  ;;  %131 = vmatpush.bf16.msra.mxu0 %v370_v9 }
  0x20   :  { %148 = vmatpush.bf16.msra.mxu1 %v350_v23 }
  0x21   :  { %199 = vmatpush.msra.mxu2 %v172_v46 }
  0x23   :  { %149 = vmatmul.bf16.vlgmr.msra.gmra.mxu1 %v530_v24  ;;  %200 = vmatpush.msra.mxu2 %v171_v47 }
  0x24   :  { %132 = vmatpush.bf16.msra.mxu0 %v362_v12 }
  0x25   :  { %201 = vmatpush.msra.mxu2 %v170_v48 }
  0x28   :  { %133 = vmatpush.bf16.msra.mxu0 %v354_v16 }
  0x2c   :  { %134 = vmatpush.bf16.msra.mxu0 %v346_v19 }
  0x2f   :  { %135 = vmatmul.bf16.vlgmr.msra.gmra.mxu0 %v530_v24  ;;  %v224_v24 = vshrl.u32 %v223_v32, 7 }
  0x31   :  { %v225_v45 = vadd.s32 8, %v224_v24 }
  0xa0   :  { %v150_v36 = vpop.f32.mrf.mxu1 }
  0xa1   :  { %v151_v37 = vadd.f32 %v150_v36, %v38_v35 }
  0xa3   :  { %v156_v38 = vsel %vm155_vm0, %v151_v37, -inf }
  0xa4   :  { %157 = vmax.xlane.f32.xlu0 %v156_v38 }
  0xa8   :  { %v152_v39 = vpop.f32.mrf.mxu1 }
  0xa9   :  { %v153_v40 = vadd.f32 %v152_v39, %v38_v35 }
  0xab   :  { %v159_v41 = vsel %vm155_vm0, %v153_v40, -inf }
  0xac   :  { %160 = vmax.xlane.f32.xlu0 %v159_v41  ;;  %v136_v36 = vpop.f32.mrf.mxu0 }
  0xb4   :  { %v138_v48 = vpop.f32.mrf.mxu0 }
 0x117   :  { %v158_v49 = vpop.xlane.xlu0 %157 }
 0x118   :  { %v162_v50 = vsub.f32 %v151_v37, %v158_v49  ;;  %v37_v37 = vperm.slane %v560_v33, 0 }
 0x11a   :  { %v164_v51 = vmin.f32 %v162_v50, 0.0  ;;  %v137_v41 = vadd.f32 %v136_v36, %v37_v37  ;;  %v227_v50 = vcvt.s32.f32 %v225_v45 }
 0x11c   :  { %v166_v52 = vmul.f32 1.442695, %v164_v51  ;;  %v407_v46 = vmul.f32 -1.442695, %v137_v41  ;;  %v139_v51 = vadd.f32 %v138_v48, %v37_v37 }
 0x11e   :  { %430 = vpow2.f32 %v166_v52  ;;  %v408_v33 = vmul.f32 -1.442695, %v139_v51 }
 0x11f   :  { %v161_v53 = vpop.xlane.xlu0 %160 }
 0x120   :  { %v163_v54 = vsub.f32 %v153_v40, %v161_v53  ;;  %v226_v40 = vcvt.s32.f32 %v224_v24 }
 0x122   :  { %v165_v55 = vmin.f32 %v163_v54, 0.0 }
 0x124   :  { %v431_v56 = vpop.eup %430  ;;  %v168_v57 = vmul.f32 1.442695, %v165_v55 }
 0x125   :  { %202 = vmatmul.f32.vlgmr.msra.gmra.mxu2 %v431_v56 }
 0x126   :  { %432 = vpow2.f32 %v168_v57 }
 0x12c   :  { %v433_v58 = vpop.eup %432 }
 0x12d   :  { %205 = vmatmul.f32.gmra.mxu2 %v433_v58 }
 0x1a8   :  { %v203_v15 = vpop.f32.mrf.mxu2 }
 0x1a9   :  { %434 = vrcp.f32 %v203_v15 }
 0x1af   :  { %v435_v20 = vpop.eup %434 }
 0x1b0   :  { %213 = vrot.lane.b32.xlu1 %v435_v20, %s450_s30  ;;  %v206_v21 = vpop.f32.mrf.mxu2 }
 0x1b1   :  { %436 = vrcp.f32 %v206_v21 }
 0x1b2   :  { %438 = vrcp.f32 %v452_v28 }
 0x1b3   :  { %440 = vrcp.f32 %v453_v34 }
 0x1b4   :  { %442 = vpow2.f32 %v407_v46 }
 0x1b5   :  { %444 = vpow2.f32 %v408_v33 }
 0x1b7   :  { %v437_v22 = vpop.eup %436 }
 0x1b8   :  { %215 = vrot.lane.b32.xlu1 %v437_v22, %s450_s30  ;;  %v439_v29 = vpop.eup %438 }
 0x1b9   :  { %v232_v30 = vmul.f32 4.0, %v439_v29  ;;  %v441_v39 = vpop.eup %440  ;;  %vm236_vm1 = vweird.f32 %v439_v29 }
 0x1ba   :  { %v247_v43 = vmul.f32 2.0, %v441_v39  ;;  %vm251_vm2 = vweird.f32 %v441_v39  ;;  %v443_v56 = vpop.eup %442 }
 0x1bb   :  { %v233_v31 = vsub.f32 1.0, %v232_v30  ;;  %v292_v60 = vadd.f32 1.0, %v443_v56  ;;  %v445_v63 = vpop.eup %444 }
 0x1bc   :  { %v248_v47 = vsub.f32 1.0, %v247_v43  ;;  %v293_v2 = vadd.f32 1.0, %v445_v63 }
 0x1bd   :  { %v234_v35 = vmul.f32 %v439_v29, %v233_v31  ;;  %446 = vrcp.f32 %v292_v60  ;;  %vm299_vm6 = vweird.f32 %v292_v60  ;;  %v305_v18 = vand.u32 2147483648, %v292_v60 }
 0x1be   :  { %v249_v52 = vmul.f32 %v441_v39, %v248_v47  ;;  %448 = vrcp.f32 %v293_v2  ;;  %vm314_vm11 = vweird.f32 %v293_v2  ;;  %v320_v24 = vand.u32 2147483648, %v293_v2 }
 0x1bf   :  { %v235_v38 = vadd.f32 %v439_v29, %v234_v35 }
 0x1c0   :  { %v250_v55 = vadd.f32 %v441_v39, %v249_v52  ;;  %v321_v43 = vor.u32 1.1754944e-38, %v320_v24 }
 0x1c1   :  { %v237_v42 = vsel %vm236_vm1, %v439_v29, %v235_v38  ;;  %v318_v38 = vand.u32 2147483647, %v293_v2 }
 0x1c2   :  { %v238_v44 = vmul.f32 %v237_v42, %v226_v40  ;;  %v239_v54 = vmul.f32 %v237_v42, %v227_v50  ;;  %v252_v59 = vsel %vm251_vm2, %v441_v39, %v250_v55 }
 0x1c3   :  { %v447_v3 = vpop.eup %446  ;;  %vm319_vm0 = vcmp.eq.f32.partialorder %v318_v38, 8.507059e+37 }
 0x1c4   :  { %v240_v49 = vfloor.f32 %v238_v44  ;;  %v241_v58 = vfloor.f32 %v239_v54  ;;  %v295_v6 = vmul.f32 %v447_v3, %v292_v60  ;;  %v449_v10 = vpop.eup %448  ;;  %vm300_vm7 = vweird.f32 %v447_v3 }
 0x1c5   :  { %v310_v13 = vmul.f32 %v449_v10, %v293_v2  ;;  %vm641_vm8 = vmor %vm299_vm6, %vm300_vm7  ;;  %vm315_vm12 = vweird.f32 %v449_v10 }
 0x1c6   :  { %v242_v53 = vmul.f32 4.0, %v240_v49  ;;  %v243_v62 = vmul.f32 4.0, %v241_v58  ;;  %v296_v9 = vsub.f32 1.0, %v295_v6  ;;  %vm316_vm15 = vmor %vm314_vm11, %vm315_vm12 }
 0x1c7   :  { %v311_v19 = vsub.f32 1.0, %v310_v13 }
 0x1c8   :  { %v244_v57 = vsub.f32 %v226_v40, %v242_v53  ;;  %v245_v1 = vsub.f32 %v227_v50, %v243_v62 }
 0x1c9   :  { %v312_v30 = vmul.f32 %v449_v10, %v311_v19 }
 0x1ca   :  { %v253_v61 = vmul.f32 %v252_v59, %v244_v57  ;;  %v254_v5 = vmul.f32 %v252_v59, %v245_v1 }
 0x1cb   :  { %v313_v37 = vadd.f32 %v449_v10, %v312_v30 }
 0x1cc   :  { %v255_v0 = vfloor.f32 %v253_v61  ;;  %v256_v8 = vfloor.f32 %v254_v5 }
 0x1cd   :  { %v317_v44 = vsel %vm316_vm15, %v449_v10, %v313_v37 }
 0x1ce   :  { %v257_v4 = vmul.f32 2.0, %v255_v0  ;;  %v258_v12 = vmul.f32 2.0, %v256_v8  ;;  %v322_v47 = vsel %vm319_vm0, %v321_v43, %v317_v44 }
 0x1d0   :  { %v259_v7 = vsub.f32 %v244_v57, %v257_v4  ;;  %v260_v16 = vsub.f32 %v245_v1, %v258_v12 }
 0x1d2   :  { %v262_v11 = vsel %vm261_vm3, %v259_v7, %v255_v0 }
 0x1d3   :  { %v265_v14 = vsel %vm264_vm4, %v262_v11, %v259_v7 }
 0x1d4   :  { %v268_v17 = vsel %vm267_vm5, %v265_v14, %v255_v0 }
 0x222   :  { %v214_v23 = vpop.permute.xlu1 %213 }
 0x223   :  { %v219_v25 = vmul.f32 %v214_v23, %v203_v15  ;;  %v297_v15 = vmul.f32 %v447_v3, %v296_v9  ;;  %v263_v23 = vsel %vm261_vm3, %v260_v16, %v256_v8 }
 0x224   :  { %v266_v29 = vsel %vm264_vm4, %v263_v23, %v260_v16 }
 0x225   :  { %274 = vrot.lane.b32.xlu2 %v219_v25, %s451_s5  ;;  %v298_v20 = vadd.f32 %v447_v3, %v297_v15  ;;  %v270_v25 = vadd.f32 0.5, %v268_v17  ;;  %v269_v36 = vsel %vm267_vm5, %v266_v29, %v256_v8 }
 0x226   :  { %v271_v41 = vadd.f32 0.5, %v269_v36 }
 0x227   :  { %v302_v28 = vsel %vm641_vm8, %v447_v3, %v298_v20 }
 0x22a   :  { %v216_v26 = vpop.permute.xlu1 %215 }
 0x22b   :  { %v220_v27 = vmul.f32 %v216_v26, %v206_v21  ;;  %v303_v21 = vand.u32 2147483647, %v292_v60  ;;  %v285_v26 = vand.u32 127, %v223_v32 }
 0x22d   :  { %276 = vrot.lane.b32.xlu2 %v220_v27, %s451_s5  ;;  %v306_v27 = vor.u32 1.1754944e-38, %v305_v18  ;;  %vm304_vm9 = vcmp.eq.f32.partialorder %v303_v21, 8.507059e+37  ;;  %vm328_vm13 = vcmp.lt.s32.totalorder %v285_v26, 84  ;;  %vm327_vm14 = vcmp.lt.s32.totalorder %v285_v26, 4 }
 0x22e   :  { %v330_v50 = vsel %vm328_vm13, %v322_v47, 0.0 }
 0x22f   :  { %v307_v35 = vsel %vm304_vm9, %v306_v27, %v302_v28 }
 0x230   :  { %v329_v40 = vsel %vm328_vm13, %v307_v35, 0.0 }
 0x27f   :  { %v275_v31 = vpop.permute.xlu2 %274 }
 0x280   :  { %v280_v34 = vadd.f32 %v275_v31, %v270_v25 }
 0x282   :  { %v282_v32 = vmul.f32 16.0, %v280_v34 }
 0x284   :  { %v325_v39 = vsel %vm324_vm10, %v282_v32, 0.0 }
 0x285   :  { %v331_v42 = vsel %vm327_vm14, %v325_v39, %v329_v40 }
 0x286   :  { %333 = vst [vmem:[%s667_s4] sm:$0xff] %v331_v42 }
 0x287   :  { %v277_v45 = vpop.permute.xlu2 %276 }
 0x288   :  { %v281_v46 = vadd.f32 %v277_v45, %v271_v41 }
 0x28a   :  { %v283_v48 = vmul.f32 16.0, %v281_v46 }
 0x28c   :  { %v326_v49 = vsel %vm324_vm10, %v283_v48, 0.0 }
 0x28d   :  { %v332_v51 = vsel %vm327_vm14, %v326_v49, %v330_v50 }
 0x28e   :  { %334 = vst [vmem:[%s667_s4 + $0x8] sm:$0xff] %v332_v51 }

// kernel: alpha_yolonas_forward.13
= control target key start
LH: loop header
LB: loop body
LE: loop exit
PB: predicated region body
PF: predicated region fallthrough
CT: control target
= control target key end

     0   :  { %s743_s15 = smov 0   ;;  %s943_s0 = inlined_call_operand.vmem [shape: bf16[32,128], index: 0, kind: input, shape index: {}]   ;;  %s944_s1 = inlined_call_operand.vmem [shape: bf16[128,256], index: 1, kind: input, shape index: {}]   ;;  %s945_s2 = inlined_call_operand.vmem [shape: f32[1,256], index: 2, kind: input, shape index: {}]   ;;  %s946_s3 = inlined_call_operand.vmem [shape: f32[128,128], index: 3, kind: input, shape index: {}]   ;;  %s947_s4 = inlined_call_operand.vmem [shape: f32[32,128], index: 4, kind: output, shape index: {}]  }
   0x1 LB: > { %s575_s16 = sadd.s32 4294967295, %s712_s15   ;;  %p579_p0 = scmp.ge.s32.totalorder %s712_s15, 1  ;;  %s712_s15 = sphi %s743_s15, %s14_s15  }
   0x2   : > { %p163_p1 = scmp.lt.s32.totalorder %s712_s15, 3 }
   0x4   : > { %p164_p2 = pnand %p579_p0, %p163_p1 }
   0x5   : > { %s580_s11 = sshll.u32 (!%p164_p2), %s575_s16, 1  ;;  %s714_s27 = smov (!%p164_p2), 4  }
   0x6   : > { %167 = sbr.rel (%p164_p2) target bundleno = 665 (0x299), region = 36  ;;  %p190_p3 = scmp.lt.s32.totalorder (!%p164_p2), %s580_s11, 3 }
   0x7   : > { %s715_s28 = smov (!%p164_p2), 124  }
   0xb   : > { %v672_v0 = vld [vmem:[%s944_s1 + $0x74] sm:$0xf]  ;;  %v648_v1 = vld [vmem:[%s944_s1 + $0x78] sm:$0xf0]  ;;  %v670_v2 = vld [vmem:[%s944_s1 + $0x64] sm:$0xf] }
   0xc   : > { %v651_v3 = vor.u32 %v672_v0, %v648_v1  ;;  %v640_v4 = vld [vmem:[%s944_s1 + $0x68] sm:$0xf0]  ;;  %v668_v6 = vld [vmem:[%s944_s1 + $0x54] sm:$0xf]  ;;  %v632_v7 = vld [vmem:[%s944_s1 + $0x58] sm:$0xf0] }
   0xd   : > { %v643_v5 = vor.u32 %v670_v2, %v640_v4  ;;  %v635_v8 = vor.u32 %v668_v6, %v632_v7  ;;  %v666_v9 = vld [vmem:[%s944_s1 + $0x44] sm:$0xf]  ;;  %v624_v10 = vld [vmem:[%s944_s1 + $0x48] sm:$0xf0]  ;;  %v664_v12 = vld [vmem:[%s944_s1 + $0x34] sm:$0xf] }
   0xe   : > { %325 = vmatpush.bf16.msra.mxu1 %v651_v3  ;;  %v627_v11 = vor.u32 %v666_v9, %v624_v10  ;;  %v616_v13 = vld [vmem:[%s944_s1 + $0x38] sm:$0xf0]  ;;  %v662_v15 = vld [vmem:[%s944_s1 + $0x24] sm:$0xf]  ;;  %v608_v16 = vld [vmem:[%s944_s1 + $0x28] sm:$0xf0] }
   0xf   : > { %v619_v14 = vor.u32 %v664_v12, %v616_v13  ;;  %v611_v17 = vor.u32 %v662_v15, %v608_v16  ;;  %v660_v18 = vld [vmem:[%s944_s1 + $0x14] sm:$0xf]  ;;  %v600_v19 = vld [vmem:[%s944_s1 + $0x18] sm:$0xf0]  ;;  %s951_s11 = smov (!%p190_p3, %s580_s11), 3  ;;  %v367_v27 = vld [vmem:[%s946_s3 + $0x68] sm:$0xff] }
  0x10   : > { %v603_v20 = vor.u32 %v660_v18, %v600_v19  ;;  %v658_v21 = vld [vmem:[%s944_s1 + $0x4] sm:$0xf]  ;;  %v592_v22 = vld [vmem:[%s944_s1 + $0x8] sm:$0xf0]  ;;  %s581_s26 = sshll.u32 %s951_s11, 2  ;;  %v369_v25 = vld [vmem:[%s946_s3 + $0x78] sm:$0xff] }
  0x11   : > { %v595_v23 = vor.u32 %v658_v21, %v592_v22  ;;  %s193_s29 = scalar_lea.vmem %s943_s0, %s581_s26  ;;  %v368_v26 = vld [vmem:[%s946_s3 + $0x70] sm:$0xff]  ;;  %370 = vmatpush.msra.mxu2 %v369_v25  ;;  %v366_v28 = vld [vmem:[%s946_s3 + $0x60] sm:$0xff]  ;;  %v365_v29 = vld [vmem:[%s946_s3 + $0x58] sm:$0xff]  ;;  %vm339_vm0 = vcmask 556032   ;;  %vm445_vm3 = vcmask 7168   ;;  %vm448_vm4 = vcmask 15360  }
  0x12   : > { %326 = vmatpush.bf16.msra.mxu1 %v643_v5  ;;  %v807_v24 = vld [vmem:[%s193_s29] sm:$0xff]  ;;  %v364_v30 = vld [vmem:[%s946_s3 + $0x50] sm:$0xff]  ;;  %v363_v31 = vld [vmem:[%s946_s3 + $0x48] sm:$0xff]  ;;  %s652_s29 = sshll.u32 %s575_s16, 4  ;;  %vm451_vm5 = vcmask 23552   ;;  %s583_s16 = sshll.u32 %s951_s11, 3 }
  0x13   : > { %371 = vmatpush.msra.mxu2 %v368_v26  ;;  %v362_v32 = vld [vmem:[%s946_s3 + $0x40] sm:$0xff]  ;;  %v361_v34 = vld [vmem:[%s946_s3 + $0x38] sm:$0xff]  ;;  %v360_v42 = vld [vmem:[%s946_s3 + $0x30] sm:$0xff]  ;;  %s406_s30 = scvt.s32.f32 %s652_s29  ;;  %vm508_vm10 = vcmask 31744   ;;  %s199_s7 = scalar_lea.vmem %s947_s4, %s583_s16 }
  0x14   : > { %v837_v33 = vld [vmem:[%s945_s2] sm:$0x3]  ;;  %v359_v43 = vld [vmem:[%s946_s3 + $0x28] sm:$0xff]  ;;  %v357_v45 = vld [vmem:[%s946_s3 + $0x18] sm:$0xff] }
  0x15   : > { %372 = vmatpush.msra.mxu2 %v367_v27  ;;  %v222_v35 = vperm.slane %v837_v33, 1  ;;  %v358_v44 = vld [vmem:[%s946_s3 + $0x20] sm:$0xff]  ;;  %v356_v46 = vld [vmem:[%s946_s3 + $0x10] sm:$0xff]  ;;  %v355_v47 = vld [vmem:[%s946_s3 + $0x8] sm:$0xff] }
  0x16   : > { %327 = vmatpush.bf16.msra.mxu1 %v635_v8  ;;  %v354_v48 = vld [vmem:[%s946_s3] sm:$0xff]  ;;  %v646_v59 = vld [vmem:[%s944_s1 + $0x70] sm:$0xf]  ;;  %v673_v60 = vld [vmem:[%s944_s1 + $0x74] sm:$0xf0] }
  0x17   : > { %373 = vmatpush.msra.mxu2 %v366_v28  ;;  %v638_v61 = vld [vmem:[%s944_s1 + $0x60] sm:$0xf]  ;;  %v647_v62 = vor.u32 %v673_v60, %v646_v59  ;;  %v671_v63 = vld [vmem:[%s944_s1 + $0x64] sm:$0xf0]  ;;  %v630_v1 = vld [vmem:[%s944_s1 + $0x50] sm:$0xf] }
  0x18   : > { %v639_v0 = vor.u32 %v671_v63, %v638_v61  ;;  %v669_v2 = vld [vmem:[%s944_s1 + $0x54] sm:$0xf0]  ;;  %v622_v4 = vld [vmem:[%s944_s1 + $0x40] sm:$0xf]  ;;  %v667_v5 = vld [vmem:[%s944_s1 + $0x44] sm:$0xf0] }
  0x19   : > { %374 = vmatpush.msra.mxu2 %v365_v29  ;;  %311 = vmatpush.bf16.msra.mxu0 %v647_v62  ;;  %v631_v3 = vor.u32 %v669_v2, %v630_v1  ;;  %v623_v6 = vor.u32 %v667_v5, %v622_v4  ;;  %v614_v7 = vld [vmem:[%s944_s1 + $0x30] sm:$0xf]  ;;  %v665_v8 = vld [vmem:[%s944_s1 + $0x34] sm:$0xf0]  ;;  %v606_v10 = vld [vmem:[%s944_s1 + $0x20] sm:$0xf] }
  0x1a   : > { %328 = vmatpush.bf16.msra.mxu1 %v627_v11  ;;  %v615_v9 = vor.u32 %v665_v8, %v614_v7  ;;  %v663_v11 = vld [vmem:[%s944_s1 + $0x24] sm:$0xf0]  ;;  %v598_v13 = vld [vmem:[%s944_s1 + $0x10] sm:$0xf]  ;;  %v716_v28 = vmov 16.0  }
  0x1b   : > { %375 = vmatpush.msra.mxu2 %v364_v30  ;;  %v607_v12 = vor.u32 %v663_v11, %v606_v10  ;;  %v659_v18 = vld [vmem:[%s944_s1 + $0x4] sm:$0xf0] }
  0x1d   : > { %376 = vmatpush.msra.mxu2 %v363_v31  ;;  %312 = vmatpush.bf16.msra.mxu0 %v639_v0  ;;  %v407_v31 = vlaneseq }
  0x1e   : > { %329 = vmatpush.bf16.msra.mxu1 %v619_v14  ;;  %v661_v14 = vld [vmem:[%s944_s1 + $0x14] sm:$0xf0] }
  0x1f   : > { %377 = vmatpush.msra.mxu2 %v362_v32  ;;  %v599_v16 = vor.u32 %v661_v14, %v598_v13 }
  0x21   : > { %378 = vmatpush.msra.mxu2 %v361_v34  ;;  %313 = vmatpush.bf16.msra.mxu0 %v631_v3  ;;  %v717_v34 = vmov 4.0  }
  0x22   : > { %330 = vmatpush.bf16.msra.mxu1 %v611_v17  ;;  %v590_v17 = vld [vmem:[%s944_s1] sm:$0xf] }
  0x23   : > { %379 = vmatpush.msra.mxu2 %v360_v42  ;;  %v591_v19 = vor.u32 %v659_v18, %v590_v17 }
  0x25   : > { %380 = vmatpush.msra.mxu2 %v359_v43  ;;  %314 = vmatpush.bf16.msra.mxu0 %v623_v6 }
  0x26   : > { %331 = vmatpush.bf16.msra.mxu1 %v603_v20 }
  0x27   : > { %381 = vmatpush.msra.mxu2 %v358_v44 }
  0x29   : > { %382 = vmatpush.msra.mxu2 %v357_v45  ;;  %315 = vmatpush.bf16.msra.mxu0 %v615_v9 }
  0x2a   : > { %332 = vmatpush.bf16.msra.mxu1 %v595_v23 }
  0x2b   : > { %383 = vmatpush.msra.mxu2 %v356_v46 }
  0x2d   : > { %333 = vmatmul.bf16.vlgmr.msra.gmra.mxu1 %v807_v24  ;;  %384 = vmatpush.msra.mxu2 %v355_v47 }
  0x2e   : > { %316 = vmatpush.bf16.msra.mxu0 %v607_v12 }
  0x2f   : > { %385 = vmatpush.msra.mxu2 %v354_v48 }
  0x32   : > { %317 = vmatpush.bf16.msra.mxu0 %v599_v16 }
  0x36   : > { %318 = vmatpush.bf16.msra.mxu0 %v591_v19 }
  0x39   : > { %319 = vmatmul.bf16.vlgmr.msra.gmra.mxu0 %v807_v24  ;;  %v408_v24 = vshrl.u32 %v407_v31, 7 }
  0x3b   : > { %v409_v43 = vadd.s32 8, %v408_v24 }
  0x3d   : > { %v411_v48 = vcvt.s32.f32 %v409_v43 }
  0xaa   : > { %v334_v36 = vpop.f32.mrf.mxu1 }
  0xab   : > { %v335_v37 = vadd.f32 %v334_v36, %v222_v35 }
  0xad   : > { %v340_v38 = vsel %vm339_vm0, %v335_v37, -inf }
  0xae   : > { %341 = vmax.xlane.f32.xlu0 %v340_v38  ;;  %v221_v38 = vperm.slane %v837_v33, 0 }
  0xb2   : > { %v336_v39 = vpop.f32.mrf.mxu1 }
  0xb3   : > { %v337_v40 = vadd.f32 %v336_v39, %v222_v35  ;;  %v412_v39 = vstv %s406_s30 }
  0xb5   : > { %v343_v41 = vsel %vm339_vm0, %v337_v40, -inf }
  0xb6   : > { %344 = vmax.xlane.f32.xlu0 %v343_v41  ;;  %v320_v36 = vpop.f32.mrf.mxu0 }
  0xb7   : > { %v321_v44 = vadd.f32 %v320_v36, %v221_v38 }
 0x121   : > { %v342_v49 = vpop.xlane.xlu0 %341 }
 0x122   : > { %v346_v50 = vsub.f32 %v335_v37, %v342_v49  ;;  %v410_v37 = vcvt.s32.f32 %v408_v24  ;;  %v653_v49 = vmul.f32 -1.442695, %v321_v44 }
 0x124   : > { %v348_v51 = vmin.f32 %v346_v50, 0.0  ;;  %v413_v42 = vadd.f32 %v412_v39, %v410_v37 }
 0x126   : > { %v350_v52 = vmul.f32 1.442695, %v348_v51  ;;  %v322_v51 = vpop.f32.mrf.mxu0 }
 0x128   : > { %686 = vpow2.f32 %v350_v52 }
 0x129   : > { %v345_v53 = vpop.xlane.xlu0 %344 }
 0x12a   : > { %v347_v54 = vsub.f32 %v337_v40, %v345_v53  ;;  %v414_v53 = vadd.f32 %v412_v39, %v411_v48 }
 0x12c   : > { %v349_v55 = vmin.f32 %v347_v54, 0.0  ;;  %v323_v54 = vadd.f32 %v322_v51, %v221_v38 }
 0x12e   : > { %v687_v56 = vpop.eup %686  ;;  %v352_v57 = vmul.f32 1.442695, %v349_v55 }
 0x12f   : > { %386 = vmatmul.f32.vlgmr.msra.gmra.mxu2 %v687_v56 }
 0x130   : > { %688 = vpow2.f32 %v352_v57  ;;  %v654_v57 = vmul.f32 -1.442695, %v323_v54 }
 0x136   : > { %v689_v58 = vpop.eup %688 }
 0x137   : > { %389 = vmatmul.f32.gmra.mxu2 %v689_v58 }
 0x1b2   : > { %v387_v15 = vpop.f32.mrf.mxu2 }
 0x1b3   : > { %690 = vrcp.f32 %v387_v15 }
 0x1b9   : > { %v691_v20 = vpop.eup %690 }
 0x1ba   : > { %397 = vrot.lane.b32.xlu1 %v691_v20, %s714_s27  ;;  %v390_v21 = vpop.f32.mrf.mxu2 }
 0x1bb   : > { %692 = vrcp.f32 %v390_v21 }
 0x1bc   : > { %694 = vrcp.f32 %v716_v28 }
 0x1bd   : > { %696 = vrcp.f32 %v717_v34 }
 0x1be   : > { %698 = vpow2.f32 %v653_v49 }
 0x1bf   : > { %700 = vpow2.f32 %v654_v57 }
 0x1c1   : > { %v693_v22 = vpop.eup %692 }
 0x1c2   : > { %399 = vrot.lane.b32.xlu1 %v693_v22, %s714_s27  ;;  %v695_v29 = vpop.eup %694 }
 0x1c3   : > { %v416_v30 = vmul.f32 16.0, %v695_v29  ;;  %v697_v41 = vpop.eup %696  ;;  %vm420_vm1 = vweird.f32 %v695_v29 }
 0x1c4   : > { %v431_v46 = vmul.f32 4.0, %v697_v41  ;;  %vm435_vm2 = vweird.f32 %v697_v41  ;;  %v699_v59 = vpop.eup %698 }
 0x1c5   : > { %v417_v32 = vsub.f32 1.0, %v416_v30  ;;  %v476_v63 = vadd.f32 1.0, %v699_v59  ;;  %v701_v2 = vpop.eup %700 }
 0x1c6   : > { %v432_v50 = vsub.f32 1.0, %v431_v46  ;;  %v477_v5 = vadd.f32 1.0, %v701_v2 }
 0x1c7   : > { %v418_v35 = vmul.f32 %v695_v29, %v417_v32  ;;  %702 = vrcp.f32 %v476_v63  ;;  %vm483_vm6 = vweird.f32 %v476_v63 }
 0x1c8   : > { %v433_v55 = vmul.f32 %v697_v41, %v432_v50  ;;  %704 = vrcp.f32 %v477_v5  ;;  %vm498_vm11 = vweird.f32 %v477_v5  ;;  %v504_v39 = vand.u32 2147483648, %v477_v5 }
 0x1c9   : > { %v419_v40 = vadd.f32 %v695_v29, %v418_v35 }
 0x1ca   : > { %v434_v58 = vadd.f32 %v697_v41, %v433_v55  ;;  %v505_v46 = vor.u32 1.1754944e-38, %v504_v39 }
 0x1cb   : > { %v421_v45 = vsel %vm420_vm1, %v695_v29, %v419_v40  ;;  %v469_v29 = vand.u32 127, %v407_v31 }
 0x1cc   : > { %v422_v47 = vmul.f32 %v421_v45, %v413_v42  ;;  %v423_v56 = vmul.f32 %v421_v45, %v414_v53  ;;  %v436_v62 = vsel %vm435_vm2, %v697_v41, %v434_v58  ;;  %v502_v41 = vand.u32 2147483647, %v477_v5 }
 0x1cd   : > { %v703_v6 = vpop.eup %702  ;;  %vm512_vm13 = vcmp.lt.s32.totalorder %v469_v29, 84  ;;  %vm511_vm14 = vcmp.lt.s32.totalorder %v469_v29, 4 }
 0x1ce   : > { %v424_v52 = vfloor.f32 %v422_v47  ;;  %v425_v61 = vfloor.f32 %v423_v56  ;;  %v479_v9 = vmul.f32 %v703_v6, %v476_v63  ;;  %v705_v13 = vpop.eup %704  ;;  %vm484_vm7 = vweird.f32 %v703_v6 }
 0x1cf   : > { %v494_v16 = vmul.f32 %v705_v13, %v477_v5  ;;  %vm920_vm8 = vmor %vm483_vm6, %vm484_vm7  ;;  %vm499_vm12 = vweird.f32 %v705_v13  ;;  %vm503_vm0 = vcmp.eq.f32.partialorder %v502_v41, 8.507059e+37 }
 0x1d0   : > { %v426_v33 = vmul.f32 16.0, %v424_v52  ;;  %v427_v1 = vmul.f32 16.0, %v425_v61  ;;  %v480_v12 = vsub.f32 1.0, %v479_v9  ;;  %vm500_vm15 = vmor %vm498_vm11, %vm499_vm12 }
 0x1d1   : > { %v495_v22 = vsub.f32 1.0, %v494_v16 }
 0x1d2   : > { %v428_v60 = vsub.f32 %v413_v42, %v426_v33  ;;  %v429_v4 = vsub.f32 %v414_v53, %v427_v1  ;;  %v481_v18 = vmul.f32 %v703_v6, %v480_v12 }
 0x1d3   : > { %v496_v34 = vmul.f32 %v705_v13, %v495_v22 }
 0x1d4   : > { %v437_v0 = vmul.f32 %v436_v62, %v428_v60  ;;  %v438_v8 = vmul.f32 %v436_v62, %v429_v4 }
 0x1d5   : > { %v497_v40 = vadd.f32 %v705_v13, %v496_v34 }
 0x1d6   : > { %v439_v3 = vfloor.f32 %v437_v0  ;;  %v440_v11 = vfloor.f32 %v438_v8 }
 0x1d7   : > { %v501_v47 = vsel %vm500_vm15, %v705_v13, %v497_v40 }
 0x1d8   : > { %v441_v7 = vmul.f32 4.0, %v439_v3  ;;  %v506_v50 = vsel %vm503_vm0, %v505_v46, %v501_v47 }
 0x1d9   : > { %v514_v53 = vsel %vm512_vm13, %v506_v50, 0.0 }
 0x1da   : > { %v443_v10 = vsub.f32 %v428_v60, %v441_v7 }
 0x1dc   : > { %v446_v14 = vsel %vm445_vm3, %v443_v10, %v439_v3 }
 0x1dd   : > { %v449_v17 = vsel %vm448_vm4, %v446_v14, %v443_v10 }
 0x1de   : > { %v452_v20 = vsel %vm451_vm5, %v449_v17, %v439_v3 }
 0x1df   : > { %v454_v28 = vadd.f32 0.5, %v452_v20 }
 0x22c   : > { %v398_v23 = vpop.permute.xlu1 %397 }
 0x22d   : > { %v403_v25 = vmul.f32 %v398_v23, %v387_v15  ;;  %v442_v15 = vmul.f32 4.0, %v440_v11  ;;  %v482_v23 = vadd.f32 %v703_v6, %v481_v18 }
 0x22f   : > { %458 = vrot.lane.b32.xlu2 %v403_v25, %s715_s28  ;;  %v444_v19 = vsub.f32 %v429_v4, %v442_v15  ;;  %v487_v25 = vand.u32 2147483647, %v476_v63  ;;  %v486_v32 = vsel %vm920_vm8, %v703_v6, %v482_v23 }
 0x231   : > { %vm488_vm9 = vcmp.eq.f32.partialorder %v487_v25, 8.507059e+37 }
 0x234   : > { %v400_v26 = vpop.permute.xlu1 %399 }
 0x235   : > { %v404_v27 = vmul.f32 %v400_v26, %v390_v21  ;;  %v489_v21 = vand.u32 2147483648, %v476_v63 }
 0x237   : > { %460 = vrot.lane.b32.xlu2 %v404_v27, %s715_s28  ;;  %v447_v27 = vsel %vm445_vm3, %v444_v19, %v440_v11  ;;  %v490_v30 = vor.u32 1.1754944e-38, %v489_v21 }
 0x238   : > { %v450_v24 = vsel %vm448_vm4, %v447_v27, %v444_v19 }
 0x239   : > { %v491_v37 = vsel %vm488_vm9, %v490_v30, %v486_v32  ;;  %v453_v38 = vsel %vm451_vm5, %v450_v24, %v440_v11 }
 0x23a   : > { %v513_v43 = vsel %vm512_vm13, %v491_v37, 0.0  ;;  %v455_v44 = vadd.f32 0.5, %v453_v38 }
 0x289   : > { %v459_v35 = vpop.permute.xlu2 %458 }
 0x28a   : > { %v464_v36 = vadd.f32 %v459_v35, %v454_v28 }
 0x28c   : > { %v466_v31 = vmul.f32 8.0, %v464_v36 }
 0x28e   : > { %v509_v42 = vsel %vm508_vm10, %v466_v31, 0.0 }
 0x28f   : > { %v515_v45 = vsel %vm511_vm14, %v509_v42, %v513_v43 }
 0x290   : > { %517 = vst [vmem:[%s199_s7] sm:$0xff] %v515_v45 }
 0x291   : > { %v461_v48 = vpop.permute.xlu2 %460 }
 0x292   : > { %v465_v49 = vadd.f32 %v461_v48, %v455_v44 }
 0x294   : > { %v467_v51 = vmul.f32 8.0, %v465_v49 }
 0x296   : > { %v510_v52 = vsel %vm508_vm10, %v467_v51, 0.0 }
 0x297   : > { %v516_v54 = vsel %vm511_vm14, %v510_v52, %v514_v53 }
 0x298   : > { %518 = vst [vmem:[%s199_s7 + $0x8] sm:$0xff] %v516_v54 }
 0x299 PF: > { %s14_s15 = sadd.s32 1, %s712_s15  }
 0x29a   : > { %p11_p4 = scmp.ge.s32.totalorder %s14_s15, 4  }
 0x29c   :  { %13 = sbr.rel (!%p11_p4) target bundleno = 1 (0x1), region = 66 }

</bundles_post_ra>
